<compile_context>
chip_gen: v7x
topology: tpu7x:2x2x1
jax: 0.10.0
libtpu: 0.0.40
codegen_flags: <defaults>
</compile_context>

<pallas_src>
import functools

import jax
import jax.numpy as jnp
import numpy as np
from jax.experimental import pallas as pl
from jax.experimental.pallas import tpu as pltpu

LANE = 128  # lane-dense feature padding


def _round_up(x, m):
    return ((x + m - 1) // m) * m


def _pad_to(x, *target):
    return jnp.pad(x, [(0, t - s) for s, t in zip(x.shape, target)])


def _pick_tile(n):
    """Node-axis tile size.  128 is full-rate on v5e's 4x128^2 MXU, minimizes zero
    padding at small node counts, and yields >=2 'parallel' M tiles so v7x's second
    TensorCore gets work; 256 fills the 256^2 MXU on v6e/v7x once the problem is big."""
    return 256 if n >= 2048 else 128


@functools.lru_cache(maxsize=None)
def _vmem_limit_bytes():
    """Generation-aware VMEM budget (half of physical: ~32 MiB on v7x, ~64 MiB on
    v5e/v6e) instead of a single hard-coded constant."""
    cap = 128 * 1024 * 1024
    try:
        cap = int(getattr(pltpu.get_tpu_info(), "vmem_capacity_bytes", cap))
    except Exception:
        pass
    return int(min(cap // 2, 96 * 1024 * 1024))


# ---------------------------------------------------------------------------
# Kernel 1: fused GCN pair   out = (adj @ t + b) @ w
#   t = x @ W_in is precomputed ONCE per layer (hoisted out of the kernel), so nothing
#   is recomputed per M tile; the next GraphConvolution's feature transform (@ w) is
#   fused into the epilogue so the hidden-width intermediate never touches HBM.
#   Grid = (M tiles, K tiles), reduction last; f32 VMEM accumulator resident across K.
# ---------------------------------------------------------------------------
def _gcn_project_kernel(adj_ref, t_ref, b_ref, w_ref, o_ref, acc_ref):
    k = pl.program_id(1)
    prod = jnp.dot(adj_ref[...], t_ref[...], preferred_element_type=jnp.float32)

    @pl.when(k == 0)
    def _():
        acc_ref[...] = prod            # direct write: skip zero-init store + re-read

    @pl.when(k > 0)
    def _():
        acc_ref[...] += prod

    @pl.when(k == pl.num_programs(1) - 1)
    def _():
        h = (acc_ref[...] + b_ref[...]).astype(t_ref.dtype)   # bias in f32, bf16 MXU operand
        o_ref[...] = jnp.dot(h, w_ref[...],
                             preferred_element_type=jnp.float32).astype(o_ref.dtype)


def gcn_project(adj, t, b, w, *, tile_m, tile_k):
    """out = (adj @ t + b) @ w with padded operands:
       adj [Mp, Kp], t [Kp, Hp], b [1, Hp] (f32), w [Hp, Np] -> out [Mp, Np]."""
    Mp, Kp = adj.shape
    Kp2, Hp = t.shape
    Hp2, Np = w.shape
    assert Kp2 == Kp and Hp2 == Hp and b.shape == (1, Hp)
    assert Mp % tile_m == 0 and Kp % tile_k == 0 and Hp % LANE == 0 and Np % LANE == 0

    grid = (Mp // tile_m, Kp // tile_k)
    dt = t.dtype.itemsize
    flops = 2 * Mp * Kp * Hp + 2 * Mp * Hp * Np
    bytes_accessed = (adj.dtype.itemsize * Mp * Kp          # adj streamed once
                      + dt * Kp * Hp * (Mp // tile_m)       # t re-streamed per M tile
                      + dt * Hp * Np + 4 * Hp               # resident w, b
                      + dt * Mp * Np)                       # output

    return pl.pallas_call(
        _gcn_project_kernel,
        out_shape=jax.ShapeDtypeStruct((Mp, Np), t.dtype),
        grid_spec=pltpu.PrefetchScalarGridSpec(
            num_scalar_prefetch=0,
            grid=grid,
            in_specs=[
                pl.BlockSpec((tile_m, tile_k), lambda i, k: (i, k)),  # adj tile (streamed)
                pl.BlockSpec((tile_k, Hp), lambda i, k: (k, 0)),      # t tile (streamed)
                pl.BlockSpec((1, Hp), lambda i, k: (0, 0)),           # b: VMEM-resident
                pl.BlockSpec((Hp, Np), lambda i, k: (0, 0)),          # w: VMEM-resident
            ],
            out_specs=pl.BlockSpec((tile_m, Np), lambda i, k: (i, 0)),
            scratch_shapes=[pltpu.VMEM((tile_m, Hp), jnp.float32)],
        ),
        compiler_params=pltpu.CompilerParams(
            dimension_semantics=("parallel", "arbitrary"),
            vmem_limit_bytes=_vmem_limit_bytes(),
        ),
        cost_estimate=pl.CostEstimate(
            flops=flops, transcendentals=0, bytes_accessed=bytes_accessed),
    )(adj, t, b, w)


# ---------------------------------------------------------------------------
# Kernel 2: fused GCN + union + ReLU
#   out = relu((adj @ t + b_in) @ w_h + x @ w_x + b_u)
#   = second GraphConvolution of a DGCN side + union Linear on concat(ho, x)
#   (expressed as two matmuls so the concat never exists) + ReLU, in ONE kernel:
#   the (M, F) "ho" intermediate never touches HBM.  x's block index ignores k, so it
#   is DMA'd once per M tile, not once per (M, K) step.
# ---------------------------------------------------------------------------
def _gcn_union_relu_kernel(adj_ref, t_ref, x_ref, bin_ref, wh_ref, wx_ref, bu_ref,
                           o_ref, acc_ref):
    k = pl.program_id(1)
    prod = jnp.dot(adj_ref[...], t_ref[...], preferred_element_type=jnp.float32)

    @pl.when(k == 0)
    def _():
        acc_ref[...] = prod

    @pl.when(k > 0)
    def _():
        acc_ref[...] += prod

    @pl.when(k == pl.num_programs(1) - 1)
    def _():
        ho = (acc_ref[...] + bin_ref[...]).astype(t_ref.dtype)
        z = jnp.dot(ho, wh_ref[...], preferred_element_type=jnp.float32)
        z = z + jnp.dot(x_ref[...], wx_ref[...], preferred_element_type=jnp.float32)
        z = z + bu_ref[...]
        o_ref[...] = jnp.maximum(z, 0.0).astype(o_ref.dtype)


def gcn_union_relu(adj, t, x, b_in, w_h, w_x, b_u, *, tile_m, tile_k):
    """out = relu((adj @ t + b_in) @ w_h + x @ w_x + b_u) with padded operands:
       adj [Mp, Kp], t [Kp, Fp], x [Mp, Fp], b_in/b_u [1, Fp] (f32), w_h/w_x [Fp, Fp]."""
    Mp, Kp = adj.shape
    Kp2, Fp = t.shape
    assert Kp2 == Kp and x.shape == (Mp, Fp)
    assert w_h.shape == (Fp, Fp) and w_x.shape == (Fp, Fp)
    assert b_in.shape == (1, Fp) and b_u.shape == (1, Fp)
    assert Mp % tile_m == 0 and Kp % tile_k == 0 and Fp % LANE == 0

    grid = (Mp // tile_m, Kp // tile_k)
    dt = t.dtype.itemsize
    flops = 2 * Mp * Kp * Fp + 4 * Mp * Fp * Fp
    bytes_accessed = (adj.dtype.itemsize * Mp * Kp
                      + dt * Kp * Fp * (Mp // tile_m)       # t re-streamed per M tile
                      + dt * Mp * Fp                        # x: one DMA per M tile
                      + 2 * dt * Fp * Fp + 2 * 4 * Fp       # resident weights / biases
                      + dt * Mp * Fp)                       # output

    return pl.pallas_call(
        _gcn_union_relu_kernel,
        out_shape=jax.ShapeDtypeStruct((Mp, Fp), x.dtype),
        grid_spec=pltpu.PrefetchScalarGridSpec(
            num_scalar_prefetch=0,
            grid=grid,
            in_specs=[
                pl.BlockSpec((tile_m, tile_k), lambda i, k: (i, k)),  # adj tile (streamed)
                pl.BlockSpec((tile_k, Fp), lambda i, k: (k, 0)),      # t tile (streamed)
                pl.BlockSpec((tile_m, Fp), lambda i, k: (i, 0)),      # x: 1 DMA per M tile
                pl.BlockSpec((1, Fp), lambda i, k: (0, 0)),           # b_in: resident
                pl.BlockSpec((Fp, Fp), lambda i, k: (0, 0)),          # w_h : resident
                pl.BlockSpec((Fp, Fp), lambda i, k: (0, 0)),          # w_x : resident
                pl.BlockSpec((1, Fp), lambda i, k: (0, 0)),           # b_u : resident
            ],
            out_specs=pl.BlockSpec((tile_m, Fp), lambda i, k: (i, 0)),
            scratch_shapes=[pltpu.VMEM((tile_m, Fp), jnp.float32)],
        ),
        compiler_params=pltpu.CompilerParams(
            dimension_semantics=("parallel", "arbitrary"),
            vmem_limit_bytes=_vmem_limit_bytes(),
        ),
        cost_estimate=pl.CostEstimate(
            flops=flops, transcendentals=0, bytes_accessed=bytes_accessed),
    )(adj, t, x, b_in, w_h, w_x, b_u)


# ---------------------------------------------------------------------------
# Parameters (random, deterministic) and padding
# ---------------------------------------------------------------------------
def init_params(key, feature_dim, hidden_dim, num_layers):
    params = []
    s_fd = 1.0 / np.sqrt(feature_dim)
    s_hd = 1.0 / np.sqrt(hidden_dim)
    s_un = 1.0 / np.sqrt(2 * feature_dim)
    for _ in range(num_layers):
        key, *ks = jax.random.split(key, 13)
        params.append({
            "gc1_w": jax.random.normal(ks[0], (feature_dim, hidden_dim), jnp.float32) * s_fd,
            "gc1_b": jax.random.normal(ks[1], (hidden_dim,), jnp.float32) * 0.01,
            "gc2_w": jax.random.normal(ks[2], (feature_dim, hidden_dim), jnp.float32) * s_fd,
            "gc2_b": jax.random.normal(ks[3], (hidden_dim,), jnp.float32) * 0.01,
            "gc3_w": jax.random.normal(ks[4], (hidden_dim, feature_dim), jnp.float32) * s_hd,
            "gc3_b": jax.random.normal(ks[5], (feature_dim,), jnp.float32) * 0.01,
            "gc4_w": jax.random.normal(ks[6], (hidden_dim, feature_dim), jnp.float32) * s_hd,
            "gc4_b": jax.random.normal(ks[7], (feature_dim,), jnp.float32) * 0.01,
            "uu_w": jax.random.normal(ks[8], (2 * feature_dim, feature_dim), jnp.float32) * s_un,
            "uu_b": jax.random.normal(ks[9], (feature_dim,), jnp.float32) * 0.01,
            "iu_w": jax.random.normal(ks[10], (2 * feature_dim, feature_dim), jnp.float32) * s_un,
            "iu_b": jax.random.normal(ks[11], (feature_dim,), jnp.float32) * 0.01,
        })
    return params


def _pad_params(params, fd, fd_p, hd_p, cd):
    """Pad and cast: MXU-operand weights -> compute dtype (bf16); biases stay f32."""
    padded = []
    for lp in params:
        padded.append({
            "gc1_w": _pad_to(lp["gc1_w"], fd_p, hd_p).astype(cd),
            "gc1_b": _pad_to(lp["gc1_b"][None, :], 1, hd_p).astype(jnp.float32),
            "gc2_w": _pad_to(lp["gc2_w"], fd_p, hd_p).astype(cd),
            "gc2_b": _pad_to(lp["gc2_b"][None, :], 1, hd_p).astype(jnp.float32),
            "gc3_w": _pad_to(lp["gc3_w"], hd_p, fd_p).astype(cd),
            "gc3_b": _pad_to(lp["gc3_b"][None, :], 1, fd_p).astype(jnp.float32),
            "gc4_w": _pad_to(lp["gc4_w"], hd_p, fd_p).astype(cd),
            "gc4_b": _pad_to(lp["gc4_b"][None, :], 1, fd_p).astype(jnp.float32),
            "uu_w1": _pad_to(lp["uu_w"][:fd], fd_p, fd_p).astype(cd),
            "uu_w2": _pad_to(lp["uu_w"][fd:], fd_p, fd_p).astype(cd),
            "uu_b": _pad_to(lp["uu_b"][None, :], 1, fd_p).astype(jnp.float32),
            "iu_w1": _pad_to(lp["iu_w"][:fd], fd_p, fd_p).astype(cd),
            "iu_w2": _pad_to(lp["iu_w"][fd:], fd_p, fd_p).astype(cd),
            "iu_b": _pad_to(lp["iu_b"][None, :], 1, fd_p).astype(jnp.float32),
        })
    return padded


# ---------------------------------------------------------------------------
# Forward passes
# ---------------------------------------------------------------------------
def bigi_forward(ufea, vfea, UV_adj, VU_adj, adj, params, compute_dtype=jnp.bfloat16):
    """Pallas equivalent of BiGI.forward (== GNN.forward in eval mode).

    MXU operands (adjacencies, features, weights) are carried in `compute_dtype`
    (default bf16: ~4x MXU throughput on v6e/v7x, half the adjacency HBM bytes); all
    accumulation, bias adds and the ReLU epilogue stay in f32.
    """
    del adj  # accepted but unused, matching the reference GNN.forward
    nu, fd = ufea.shape
    ni, fd2 = vfea.shape
    assert fd2 == fd
    hd = params[0]["gc1_w"].shape[1]

    cd = jnp.dtype(compute_dtype)
    tile_u = _pick_tile(nu)   # tile size along the user-node axis
    tile_i = _pick_tile(ni)   # tile size along the item-node axis
    nu_p = _round_up(nu, tile_u)
    ni_p = _round_up(ni, tile_i)
    fd_p = _round_up(fd, LANE)
    hd_p = _round_up(hd, LANE)

    # Pad ONCE; every intermediate stays padded (lane-dense, tile-aligned) across layers
    # and is sliced once at the very end.  Padded adjacency rows/cols are zero, so padded
    # node rows only ever carry bias junk and never contaminate real rows (the adjacency
    # columns that would read them are zero); padded feature columns stay exactly zero
    # because the corresponding weight rows/cols and bias entries are zero-padded.
    u = _pad_to(ufea, nu_p, fd_p).astype(cd)
    v = _pad_to(vfea, ni_p, fd_p).astype(cd)
    uv = _pad_to(UV_adj, nu_p, ni_p).astype(cd)   # [user, item]
    vu = _pad_to(VU_adj, ni_p, nu_p).astype(cd)   # [item, user]
    pparams = _pad_params(params, fd, fd_p, hd_p, cd)

    # TODO(synk): full per-side fusion (gc1 -> gc3 -> union in ONE pallas_call with the
    # [n, hd] intermediate resident in VMEM) and block-sparse adjacency skipping via
    # scalar-prefetched block-CSR index_maps are follow-ups that matter at real BiGI
    # node counts, not at these shapes.
    for lp in pparams:
        # Hoisted feature transforms (perf review item 1): x @ W is computed ONCE per
        # layer (tiny XLA matmul) instead of once per output M tile inside the kernel.
        t1u = jnp.dot(u, lp["gc1_w"], preferred_element_type=jnp.float32).astype(cd)
        t1v = jnp.dot(v, lp["gc2_w"], preferred_element_type=jnp.float32).astype(cd)
        # gc1/gc2 aggregation fused with gc3/gc4's feature transform.
        t3u = gcn_project(vu, t1u, lp["gc1_b"], lp["gc3_w"],
                          tile_m=tile_i, tile_k=tile_u)            # [ni_p, fd_p]
        t3v = gcn_project(uv, t1v, lp["gc2_b"], lp["gc4_w"],
                          tile_m=tile_u, tile_k=tile_i)            # [nu_p, fd_p]
        # gc3/gc4 aggregation fused with bias + union Linear (two matmuls) + ReLU.
        u = gcn_union_relu(uv, t3u, u, lp["gc3_b"], lp["uu_w1"], lp["uu_w2"], lp["uu_b"],
                           tile_m=tile_u, tile_k=tile_i)           # [nu_p, fd_p]
        v = gcn_union_relu(vu, t3v, v, lp["gc4_b"], lp["iu_w1"], lp["iu_w2"], lp["iu_b"],
                           tile_m=tile_i, tile_k=tile_u)           # [ni_p, fd_p]

    return u[:nu, :fd].astype(ufea.dtype), v[:ni, :fd].astype(vfea.dtype)


def bigi_forward_reference(ufea, vfea, UV_adj, VU_adj, adj, params, compute_dtype=None):
    """Plain-JAX reference.  compute_dtype=None reproduces the exact f32 PyTorch
    semantics of GNN.forward (eval mode); compute_dtype=jnp.bfloat16 additionally
    mirrors the Pallas path's cast points (bf16 MXU operands, f32 accumulation) for a
    tight numerical check of the kernel logic."""
    del adj
    f32 = jnp.float32
    cast = (lambda a: a) if compute_dtype is None else (lambda a: a.astype(compute_dtype))
    fd = ufea.shape[1]
    u, v = cast(ufea), cast(vfea)
    UV, VU = cast(UV_adj), cast(VU_adj)
    for lp in params:
        w1, w2 = cast(lp["gc1_w"]), cast(lp["gc2_w"])
        w3, w4 = cast(lp["gc3_w"]), cast(lp["gc4_w"])
        uu1, uu2 = cast(lp["uu_w"][:fd]), cast(lp["uu_w"][fd:])
        iu1, iu2 = cast(lp["iu_w"][:fd]), cast(lp["iu_w"][fd:])
        t1u = cast(jnp.dot(u, w1, preferred_element_type=f32))
        t1v = cast(jnp.dot(v, w2, preferred_element_type=f32))
        h1u = jnp.dot(VU, t1u, preferred_element_type=f32) + lp["gc1_b"]
        h1v = jnp.dot(UV, t1v, preferred_element_type=f32) + lp["gc2_b"]
        t3u = cast(jnp.dot(cast(h1u), w3, preferred_element_type=f32))
        t3v = cast(jnp.dot(cast(h1v), w4, preferred_element_type=f32))
        h3u = jnp.dot(UV, t3u, preferred_element_type=f32) + lp["gc3_b"]
        h3v = jnp.dot(VU, t3v, preferred_element_type=f32) + lp["gc4_b"]
        zu = (jnp.dot(cast(h3u), uu1, preferred_element_type=f32)
              + jnp.dot(u, uu2, preferred_element_type=f32) + lp["uu_b"])
        zv = (jnp.dot(cast(h3v), iu1, preferred_element_type=f32)
              + jnp.dot(v, iu2, preferred_element_type=f32) + lp["iu_b"])
        u, v = cast(jax.nn.relu(zu)), cast(jax.nn.relu(zv))
    return u.astype(f32), v.astype(f32)


if __name__ == "__main__":
    key = jax.random.PRNGKey(0)
    num_user, num_item = 192, 160
    feature_dim, hidden_dim, num_layers = 64, 32, 2

    k_u, k_v, k_a, k_p = jax.random.split(key, 4)
    ufea = jax.random.normal(k_u, (num_user, feature_dim), jnp.float32)
    vfea = jax.random.normal(k_v, (num_item, feature_dim), jnp.float32)

    # Dense, row-normalized bipartite adjacency (the reference uses sparse spmm on the
    # normalized adjacency; dense is numerically equivalent at these sizes).
    A = (jax.random.uniform(k_a, (num_user, num_item)) < 0.05).astype(jnp.float32)
    UV_adj = A / (A.sum(axis=1, keepdims=True) + 1.0)
    VU_adj = A.T / (A.T.sum(axis=1, keepdims=True) + 1.0)
    adj = jnp.zeros((num_user + num_item, num_user + num_item), jnp.float32)  # unused

    params = init_params(k_p, feature_dim, hidden_dim, num_layers)

    learn_user, learn_item = jax.jit(bigi_forward)(ufea, vfea, UV_adj, VU_adj, adj, params)
    jax.block_until_ready((learn_user, learn_item))

    # Tight check: reference with the SAME bf16 cast points (isolates kernel/tiling
    # correctness from the intended bf16 operand rounding).
    mim_u, mim_v = bigi_forward_reference(ufea, vfea, UV_adj, VU_adj, adj, params,
                                          compute_dtype=jnp.bfloat16)
    np.testing.assert_allclose(np.asarray(learn_user), np.asarray(mim_u), rtol=1e-2, atol=1e-2)
    np.testing.assert_allclose(np.asarray(learn_item), np.asarray(mim_v), rtol=1e-2, atol=1e-2)

    # Semantic check: exact f32 PyTorch-equivalent reference; tolerance covers the bf16
    # MXU-operand rounding adopted per the performance review.
    ref_u, ref_v = bigi_forward_reference(ufea, vfea, UV_adj, VU_adj, adj, params)
    np.testing.assert_allclose(np.asarray(learn_user), np.asarray(ref_u), rtol=5e-2, atol=5e-2)
    np.testing.assert_allclose(np.asarray(learn_item), np.asarray(ref_v), rtol=5e-2, atol=5e-2)

    print("KERNEL_OK")
</pallas_src>

<mosaic_0001>
module attributes {stable_mosaic.version = 11 : i64} {
  func.func @_gcn_project_kernel(%arg0: i32, %arg1: i32, %arg2: memref<128x128xbf16, #tpu.memory_space<vmem>>, %arg3: memref<128x128xbf16, #tpu.memory_space<vmem>>, %arg4: memref<1x128xf32, #tpu.memory_space<vmem>>, %arg5: memref<128x128xbf16, #tpu.memory_space<vmem>>, %arg6: memref<128x128xbf16, #tpu.memory_space<vmem>>, %arg7: memref<128x128xf32, #tpu.memory_space<vmem>>) attributes {dimension_semantics = [#tpu.dimension_semantics<parallel>, #tpu.dimension_semantics<arbitrary>], iteration_bounds = array<i64: 2, 2>, scalar_prefetch = 0 : i64, scratch_operands = 1 : i64, tpu.core_type = #tpu.core_type<tc>, window_params = [{transform_indices = @transform_0, window_bounds = array<i64: 128, 128>}, {transform_indices = @transform_1, window_bounds = array<i64: 128, 128>}, {pipeline_mode = #tpu.pipeline_mode<synchronous>, transform_indices = @transform_2, window_bounds = array<i64: 1, 128>}, {pipeline_mode = #tpu.pipeline_mode<synchronous>, transform_indices = @transform_3, window_bounds = array<i64: 128, 128>}, {transform_indices = @transform_4, window_bounds = array<i64: 128, 128>}]} {
    %c0 = arith.constant 0 : index
    %c0_0 = arith.constant 0 : index
    %0 = vector.load %arg2[%c0, %c0_0] : memref<128x128xbf16, #tpu.memory_space<vmem>>, vector<128x128xbf16>
    %c0_1 = arith.constant 0 : index
    %c0_2 = arith.constant 0 : index
    %1 = vector.load %arg3[%c0_1, %c0_2] : memref<128x128xbf16, #tpu.memory_space<vmem>>, vector<128x128xbf16>
    %cst = arith.constant dense<0.000000e+00> : vector<128x128xf32>
    %2 = tpu.matmul %0, %1, %cst {dimension_numbers = #tpu.dot_dimension_numbers<[1], [0], [0], [1], [0, 0, 1, 1], [], []>} : vector<128x128xbf16>, vector<128x128xbf16>, vector<128x128xf32> -> vector<128x128xf32>
    %c0_i32 = arith.constant 0 : i32
    %3 = arith.cmpi eq, %arg1, %c0_i32 : i32
    %4 = arith.extui %3 : i1 to i32
    %c0_i32_3 = arith.constant 0 : i32
    %5 = arith.cmpi ne, %4, %c0_i32_3 : i32
    scf.if %5 {
      %c0_7 = arith.constant 0 : index
      %c0_8 = arith.constant 0 : index
      %12 = vector.load %arg7[%c0_7, %c0_8] : memref<128x128xf32, #tpu.memory_space<vmem>>, vector<128x128xf32>
      tpu.vector_store %arg7[%c0_7, %c0_8], %2 {strides = array<i32>} : memref<128x128xf32, #tpu.memory_space<vmem>>, vector<128x128xf32>,
    } else {
    }
    %c0_i32_4 = arith.constant 0 : i32
    %6 = arith.cmpi sgt, %arg1, %c0_i32_4 : i32
    %7 = arith.extui %6 : i1 to i32
    %c0_i32_5 = arith.constant 0 : i32
    %8 = arith.cmpi ne, %7, %c0_i32_5 : i32
    scf.if %8 {
      %c0_7 = arith.constant 0 : index
      %c0_8 = arith.constant 0 : index
      %12 = vector.load %arg7[%c0_7, %c0_8] : memref<128x128xf32, #tpu.memory_space<vmem>>, vector<128x128xf32>
      %13 = arith.addf %12, %2 : vector<128x128xf32>
      %c0_9 = arith.constant 0 : index
      %c0_10 = arith.constant 0 : index
      %14 = vector.load %arg7[%c0_9, %c0_10] : memref<128x128xf32, #tpu.memory_space<vmem>>, vector<128x128xf32>
      tpu.vector_store %arg7[%c0_9, %c0_10], %13 {strides = array<i32>} : memref<128x128xf32, #tpu.memory_space<vmem>>, vector<128x128xf32>,
    } else {
    }
    %c1_i32 = arith.constant 1 : i32
    %9 = arith.cmpi eq, %arg1, %c1_i32 : i32
    %10 = arith.extui %9 : i1 to i32
    %c0_i32_6 = arith.constant 0 : i32
    %11 = arith.cmpi ne, %10, %c0_i32_6 : i32
    scf.if %11 {
      %c0_7 = arith.constant 0 : index
      %c0_8 = arith.constant 0 : index
      %12 = vector.load %arg7[%c0_7, %c0_8] : memref<128x128xf32, #tpu.memory_space<vmem>>, vector<128x128xf32>
      %c0_9 = arith.constant 0 : index
      %c0_10 = arith.constant 0 : index
      %13 = vector.load %arg4[%c0_9, %c0_10] : memref<1x128xf32, #tpu.memory_space<vmem>>, vector<1x128xf32>
      %14 = vector.broadcast %13 : vector<1x128xf32> to vector<128x128xf32>
      %15 = arith.addf %12, %14 : vector<128x128xf32>
      %16 = arith.truncf %15 : vector<128x128xf32> to vector<128x128xbf16>
      %c0_11 = arith.constant 0 : index
      %c0_12 = arith.constant 0 : index
      %17 = vector.load %arg5[%c0_11, %c0_12] : memref<128x128xbf16, #tpu.memory_space<vmem>>, vector<128x128xbf16>
      %cst_13 = arith.constant dense<0.000000e+00> : vector<128x128xf32>
      %18 = tpu.matmul %16, %17, %cst_13 {dimension_numbers = #tpu.dot_dimension_numbers<[1], [0], [0], [1], [0, 0, 1, 1], [], []>} : vector<128x128xbf16>, vector<128x128xbf16>, vector<128x128xf32> -> vector<128x128xf32>
      %19 = arith.truncf %18 : vector<128x128xf32> to vector<128x128xbf16>
      %c0_14 = arith.constant 0 : index
      %c0_15 = arith.constant 0 : index
      %20 = vector.load %arg6[%c0_14, %c0_15] : memref<128x128xbf16, #tpu.memory_space<vmem>>, vector<128x128xbf16>
      tpu.vector_store %arg6[%c0_14, %c0_15], %19 {strides = array<i32>} : memref<128x128xbf16, #tpu.memory_space<vmem>>, vector<128x128xbf16>,
    } else {
    }
    return
  }
  func.func @transform_0(%arg0: i32, %arg1: i32) -> (i32, i32) {
    %c0_i32 = arith.constant 0 : i32
    return %arg0, %arg1 : i32, i32
  }
  func.func @transform_1(%arg0: i32, %arg1: i32) -> (i32, i32) {
    %c0_i32 = arith.constant 0 : i32
    %c0_i32_0 = arith.constant 0 : i32
    return %arg1, %c0_i32 : i32, i32
  }
  func.func @transform_2(%arg0: i32, %arg1: i32) -> (i32, i32) {
    %c0_i32 = arith.constant 0 : i32
    %c0_i32_0 = arith.constant 0 : i32
    %c0_i32_1 = arith.constant 0 : i32
    return %c0_i32, %c0_i32_0 : i32, i32
  }
  func.func @transform_3(%arg0: i32, %arg1: i32) -> (i32, i32) {
    %c0_i32 = arith.constant 0 : i32
    %c0_i32_0 = arith.constant 0 : i32
    %c0_i32_1 = arith.constant 0 : i32
    return %c0_i32, %c0_i32_0 : i32, i32
  }
  func.func @transform_4(%arg0: i32, %arg1: i32) -> (i32, i32) {
    %c0_i32 = arith.constant 0 : i32
    %c0_i32_0 = arith.constant 0 : i32
    return %arg0, %c0_i32 : i32, i32
  }
}

module attributes {stable_mosaic.version = 11 : i64} {
  func.func @_gcn_union_relu_kernel(%arg0: i32, %arg1: i32, %arg2: memref<128x128xbf16, #tpu.memory_space<vmem>>, %arg3: memref<128x128xbf16, #tpu.memory_space<vmem>>, %arg4: memref<128x128xbf16, #tpu.memory_space<vmem>>, %arg5: memref<1x128xf32, #tpu.memory_space<vmem>>, %arg6: memref<128x128xbf16, #tpu.memory_space<vmem>>, %arg7: memref<128x128xbf16, #tpu.memory_space<vmem>>, %arg8: memref<1x128xf32, #tpu.memory_space<vmem>>, %arg9: memref<128x128xbf16, #tpu.memory_space<vmem>>, %arg10: memref<128x128xf32, #tpu.memory_space<vmem>>) attributes {dimension_semantics = [#tpu.dimension_semantics<parallel>, #tpu.dimension_semantics<arbitrary>], iteration_bounds = array<i64: 2, 2>, scalar_prefetch = 0 : i64, scratch_operands = 1 : i64, tpu.core_type = #tpu.core_type<tc>, window_params = [{transform_indices = @transform_0, window_bounds = array<i64: 128, 128>}, {transform_indices = @transform_1, window_bounds = array<i64: 128, 128>}, {transform_indices = @transform_2, window_bounds = array<i64: 128, 128>}, {pipeline_mode = #tpu.pipeline_mode<synchronous>, transform_indices = @transform_3, window_bounds = array<i64: 1, 128>}, {pipeline_mode = #tpu.pipeline_mode<synchronous>, transform_indices = @transform_4, window_bounds = array<i64: 128, 128>}, {pipeline_mode = #tpu.pipeline_mode<synchronous>, transform_indices = @transform_5, window_bounds = array<i64: 128, 128>}, {pipeline_mode = #tpu.pipeline_mode<synchronous>, transform_indices = @transform_6, window_bounds = array<i64: 1, 128>}, {transform_indices = @transform_7, window_bounds = array<i64: 128, 128>}]} {
    %c0 = arith.constant 0 : index
    %c0_0 = arith.constant 0 : index
    %0 = vector.load %arg2[%c0, %c0_0] : memref<128x128xbf16, #tpu.memory_space<vmem>>, vector<128x128xbf16>
    %c0_1 = arith.constant 0 : index
    %c0_2 = arith.constant 0 : index
    %1 = vector.load %arg3[%c0_1, %c0_2] : memref<128x128xbf16, #tpu.memory_space<vmem>>, vector<128x128xbf16>
    %cst = arith.constant dense<0.000000e+00> : vector<128x128xf32>
    %2 = tpu.matmul %0, %1, %cst {dimension_numbers = #tpu.dot_dimension_numbers<[1], [0], [0], [1], [0, 0, 1, 1], [], []>} : vector<128x128xbf16>, vector<128x128xbf16>, vector<128x128xf32> -> vector<128x128xf32>
    %c0_i32 = arith.constant 0 : i32
    %3 = arith.cmpi eq, %arg1, %c0_i32 : i32
    %4 = arith.extui %3 : i1 to i32
    %c0_i32_3 = arith.constant 0 : i32
    %5 = arith.cmpi ne, %4, %c0_i32_3 : i32
    scf.if %5 {
      %c0_7 = arith.constant 0 : index
      %c0_8 = arith.constant 0 : index
      %12 = vector.load %arg10[%c0_7, %c0_8] : memref<128x128xf32, #tpu.memory_space<vmem>>, vector<128x128xf32>
      tpu.vector_store %arg10[%c0_7, %c0_8], %2 {strides = array<i32>} : memref<128x128xf32, #tpu.memory_space<vmem>>, vector<128x128xf32>,
    } else {
    }
    %c0_i32_4 = arith.constant 0 : i32
    %6 = arith.cmpi sgt, %arg1, %c0_i32_4 : i32
    %7 = arith.extui %6 : i1 to i32
    %c0_i32_5 = arith.constant 0 : i32
    %8 = arith.cmpi ne, %7, %c0_i32_5 : i32
    scf.if %8 {
      %c0_7 = arith.constant 0 : index
      %c0_8 = arith.constant 0 : index
      %12 = vector.load %arg10[%c0_7, %c0_8] : memref<128x128xf32, #tpu.memory_space<vmem>>, vector<128x128xf32>
      %13 = arith.addf %12, %2 : vector<128x128xf32>
      %c0_9 = arith.constant 0 : index
      %c0_10 = arith.constant 0 : index
      %14 = vector.load %arg10[%c0_9, %c0_10] : memref<128x128xf32, #tpu.memory_space<vmem>>, vector<128x128xf32>
      tpu.vector_store %arg10[%c0_9, %c0_10], %13 {strides = array<i32>} : memref<128x128xf32, #tpu.memory_space<vmem>>, vector<128x128xf32>,
    } else {
    }
    %c1_i32 = arith.constant 1 : i32
    %9 = arith.cmpi eq, %arg1, %c1_i32 : i32
    %10 = arith.extui %9 : i1 to i32
    %c0_i32_6 = arith.constant 0 : i32
    %11 = arith.cmpi ne, %10, %c0_i32_6 : i32
    scf.if %11 {
      %c0_7 = arith.constant 0 : index
      %c0_8 = arith.constant 0 : index
      %12 = vector.load %arg10[%c0_7, %c0_8] : memref<128x128xf32, #tpu.memory_space<vmem>>, vector<128x128xf32>
      %c0_9 = arith.constant 0 : index
      %c0_10 = arith.constant 0 : index
      %13 = vector.load %arg5[%c0_9, %c0_10] : memref<1x128xf32, #tpu.memory_space<vmem>>, vector<1x128xf32>
      %14 = vector.broadcast %13 : vector<1x128xf32> to vector<128x128xf32>
      %15 = arith.addf %12, %14 : vector<128x128xf32>
      %16 = arith.truncf %15 : vector<128x128xf32> to vector<128x128xbf16>
      %c0_11 = arith.constant 0 : index
      %c0_12 = arith.constant 0 : index
      %17 = vector.load %arg6[%c0_11, %c0_12] : memref<128x128xbf16, #tpu.memory_space<vmem>>, vector<128x128xbf16>
      %cst_13 = arith.constant dense<0.000000e+00> : vector<128x128xf32>
      %18 = tpu.matmul %16, %17, %cst_13 {dimension_numbers = #tpu.dot_dimension_numbers<[1], [0], [0], [1], [0, 0, 1, 1], [], []>} : vector<128x128xbf16>, vector<128x128xbf16>, vector<128x128xf32> -> vector<128x128xf32>
      %c0_14 = arith.constant 0 : index
      %c0_15 = arith.constant 0 : index
      %19 = vector.load %arg4[%c0_14, %c0_15] : memref<128x128xbf16, #tpu.memory_space<vmem>>, vector<128x128xbf16>
      %c0_16 = arith.constant 0 : index
      %c0_17 = arith.constant 0 : index
      %20 = vector.load %arg7[%c0_16, %c0_17] : memref<128x128xbf16, #tpu.memory_space<vmem>>, vector<128x128xbf16>
      %cst_18 = arith.constant dense<0.000000e+00> : vector<128x128xf32>
      %21 = tpu.matmul %19, %20, %cst_18 {dimension_numbers = #tpu.dot_dimension_numbers<[1], [0], [0], [1], [0, 0, 1, 1], [], []>} : vector<128x128xbf16>, vector<128x128xbf16>, vector<128x128xf32> -> vector<128x128xf32>
      %22 = arith.addf %18, %21 : vector<128x128xf32>
      %c0_19 = arith.constant 0 : index
      %c0_20 = arith.constant 0 : index
      %23 = vector.load %arg8[%c0_19, %c0_20] : memref<1x128xf32, #tpu.memory_space<vmem>>, vector<1x128xf32>
      %24 = vector.broadcast %23 : vector<1x128xf32> to vector<128x128xf32>
      %25 = arith.addf %22, %24 : vector<128x128xf32>
      %cst_21 = arith.constant 0.000000e+00 : f32
      %26 = vector.broadcast %cst_21 : f32 to vector<128x128xf32>
      %27 = arith.maximumf %25, %26 : vector<128x128xf32>
      %28 = arith.truncf %27 : vector<128x128xf32> to vector<128x128xbf16>
      %c0_22 = arith.constant 0 : index
      %c0_23 = arith.constant 0 : index
      %29 = vector.load %arg9[%c0_22, %c0_23] : memref<128x128xbf16, #tpu.memory_space<vmem>>, vector<128x128xbf16>
      tpu.vector_store %arg9[%c0_22, %c0_23], %28 {strides = array<i32>} : memref<128x128xbf16, #tpu.memory_space<vmem>>, vector<128x128xbf16>,
    } else {
    }
    return
  }
  func.func @transform_0(%arg0: i32, %arg1: i32) -> (i32, i32) {
    %c0_i32 = arith.constant 0 : i32
    return %arg0, %arg1 : i32, i32
  }
  func.func @transform_1(%arg0: i32, %arg1: i32) -> (i32, i32) {
    %c0_i32 = arith.constant 0 : i32
    %c0_i32_0 = arith.constant 0 : i32
    return %arg1, %c0_i32 : i32, i32
  }
  func.func @transform_2(%arg0: i32, %arg1: i32) -> (i32, i32) {
    %c0_i32 = arith.constant 0 : i32
    %c0_i32_0 = arith.constant 0 : i32
    return %arg0, %c0_i32 : i32, i32
  }
  func.func @transform_3(%arg0: i32, %arg1: i32) -> (i32, i32) {
    %c0_i32 = arith.constant 0 : i32
    %c0_i32_0 = arith.constant 0 : i32
    %c0_i32_1 = arith.constant 0 : i32
    return %c0_i32, %c0_i32_0 : i32, i32
  }
  func.func @transform_4(%arg0: i32, %arg1: i32) -> (i32, i32) {
    %c0_i32 = arith.constant 0 : i32
    %c0_i32_0 = arith.constant 0 : i32
    %c0_i32_1 = arith.constant 0 : i32
    return %c0_i32, %c0_i32_0 : i32, i32
  }
  func.func @transform_5(%arg0: i32, %arg1: i32) -> (i32, i32) {
    %c0_i32 = arith.constant 0 : i32
    %c0_i32_0 = arith.constant 0 : i32
    %c0_i32_1 = arith.constant 0 : i32
    return %c0_i32, %c0_i32_0 : i32, i32
  }
  func.func @transform_6(%arg0: i32, %arg1: i32) -> (i32, i32) {
    %c0_i32 = arith.constant 0 : i32
    %c0_i32_0 = arith.constant 0 : i32
    %c0_i32_1 = arith.constant 0 : i32
    return %c0_i32, %c0_i32_0 : i32, i32
  }
  func.func @transform_7(%arg0: i32, %arg1: i32) -> (i32, i32) {
    %c0_i32 = arith.constant 0 : i32
    %c0_i32_0 = arith.constant 0 : i32
    return %arg0, %c0_i32 : i32, i32
  }
}

</mosaic_0001>

<bundles_post_ra>
// kernel: bigi_forward.9
= control target key start
LH: loop header
LB: loop body
LE: loop exit
PB: predicated region body
PF: predicated region fallthrough
CT: control target
= control target key end

     0   :  { %s2273_s0 = inlined_call_operand.hbm [shape: bf16[256,256], index: 0, kind: input, shape index: {}]   ;;  %s2274_s1 = inlined_call_operand.hbm [shape: bf16[256,128], index: 1, kind: input, shape index: {}]   ;;  %s2275_s2 = inlined_call_operand.hbm [shape: f32[1,128], index: 2, kind: input, shape index: {}]   ;;  %s2276_s3 = inlined_call_operand.hbm [shape: bf16[128,128], index: 3, kind: input, shape index: {}]   ;;  %s2277_s4 = inlined_call_operand.hbm [shape: bf16[256,128], index: 4, kind: output, shape index: {}]  }
   0x1   :  { %2301 = sst [smem:[#allocation26_spill]] %s2275_s2 }
   0x2   :  { %2302 = sst [smem:[#allocation27_spill]] %s2276_s3 }
   0x3   :  { %2303 = sst [smem:[#allocation28_spill]] %s2277_s4 }
   0x4   :  { %9 = vsyncpa [#allocation4], 0 }
   0x5   :  { %11 = vsyncpa [#allocation4 + $0x1], 0 }
   0x6   :  { %12 = vsyncpa [#allocation7], 0 }
   0x7   :  { %14 = vsyncpa [#allocation7 + $0x1], 0 }
   0x8   :  { %15 = vsyncpa [#allocation10], 0 }
   0x9   :  { %16 = vsyncpa [#allocation5], 0 }
   0xa   :  { %18 = vsyncpa [#allocation5 + $0x1], 0  ;;  %s1788_s15 = smov 0   ;;  %s1790_s16 = smov 0  }
   0xb   :  { %s1792_s17 = smov 0   ;;  %s1794_s18 = smov 0  }
   0xc   :  { %s1796_s19 = smov 0   ;;  %s1798_s20 = smov 0  }
   0xd   :  { %s1800_s21 = smov 0   ;;  %s1802_s22 = smov 0  }
   0xe   :  { %s1804_s23 = smov 0   ;;  %s1806_s24 = smov 0  }
   0xf   :  { %s1808_s25 = smov 0   ;;  %s1810_s26 = smov 0  }
  0x10   :  { %s1812_s27 = smov 0   ;;  %s1814_s28 = smov 0  }
  0x11 LB: > { %2304 = sst [smem:[#allocation17_spill]] %s1699_s15  ;;  %s1855_s29 = sadd.s32 4294967295, %s1751_s28   ;;  %s1751_s28 = sphi %s1814_s28, %s24_s28   ;;  %s1747_s27 = sphi %s1812_s27, %s2364_s27   ;;  %s1743_s26 = sphi %s1810_s26, %s2363_s26   ;;  %s1739_s25 = sphi %s1808_s25, %s2362_s25   ;;  %s1735_s24 = sphi %s1806_s24, %s2361_s24   ;;  %s1731_s23 = sphi %s1804_s23, %s2360_s23   ;;  %s1727_s22 = sphi %s1802_s22, %s2359_s22   ;;  %s1723_s21 = sphi %s1800_s21, %s2358_s21   ;;  %s1719_s20 = sphi %s1798_s20, %s2357_s20   ;;  %s1715_s19 = sphi %s1796_s19, %s2356_s19   ;;  %s1711_s18 = sphi %s1794_s18, %s2355_s18   ;;  %s1707_s17 = sphi %s1792_s17, %s2354_s17   ;;  %s1703_s16 = sphi %s1790_s16, %s2353_s16   ;;  %s1699_s15 = sphi %s1788_s15, %s2351_s15  }
  0x12   : > { %2305 = sst [smem:[#allocation18_spill]] %s1703_s16  ;;  %s1035_s30 = sadd.s32 4294967294, %s1751_s28  }
  0x13   : > { %2306 = sst [smem:[#allocation19_spill]] %s1735_s24  ;;  %p58_p0 = scmp.ne.s32.totalorder %s1727_s22, %s1723_s21 }
  0x14   : > { %2307 = sst [smem:[#allocation20_spill]] %s1739_s25  ;;  %p2281_p1 = scmp.eq.s32.totalorder %s1855_s29, 0 }
  0x15   : > { %2308 = sst [smem:[#allocation21_spill]] %s1855_s29  ;;  %p84_p2 = scmp.ne.s32.totalorder %s1715_s19, %s1711_s18 }
  0x16   : > { %p1864_p3 = por %p2281_p1, %p58_p0  ;;  %p149_p4 = scmp.ne.s32.totalorder %s1707_s17, %s1703_s16 }
  0x17   : > { %p1872_p5 = por %p84_p2, %p2281_p1  ;;  %p150_p6 = scmp.eq.s32.totalorder %s1855_s29, 3 }
  0x18   : > { %s2309_s6 = scalar_select %p1864_p3, 1, 0 }
  0x19   : > { %s2310_s7 = scalar_select %p1872_p5, 1, 0 }
  0x1a   : > { %p155_p7 = scmp.ne.s32.totalorder %s1703_s16, %s1699_s15  ;;  %p156_p8 = scmp.eq.s32.totalorder %s1035_s30, 3 }
  0x1b   : > { %2311 = sst [smem:[#allocation22_spill]] %s2310_s7  ;;  %p1879_p9 = por %p150_p6, %p149_p4 }
  0x1c   : > { %p1036_p10 = scmp.ge.s32.totalorder %s1751_s28, 1  ;;  %p1884_p11 = por %p156_p8, %p155_p7 }
  0x1d   : > { %s2312_s8 = scalar_select %p1879_p9, 1, 0 }
  0x1e   : > { %s2314_s9 = scalar_select %p1884_p11, 1, 0 }
  0x1f   : > { %2313 = sst [smem:[#allocation23_spill]] %s2312_s8  ;;  %p163_p12 = scmp.lt.s32.totalorder %s1751_s28, 5 }
  0x20   : > { %2315 = sst [smem:[#allocation24_spill]] %s2314_s9  ;;  %s1753_s11 = smov [#allocation8]  }
  0x21   : > { %p1889_p13 = pnand %p1036_p10, %p163_p12  ;;  %s176_s12 = sshll.u32 %s1753_s11, 4  ;;  %s177_s12 = int_to_ptr.vmem [resolvable:$true] %s176_s12 }
  0x22   : > { %s1754_s13 = smov [#allocation9]   ;;  %s2318_s2 = sld [smem:[#allocation26_spill]] }
  0x23   : > { %s2316_s10 = scalar_select %p1889_p13, 1, 0 }
  0x24   : > { %p1310_p0 = pneg %p1889_p13  ;;  %s186_s14 = sshll.u32 %s1754_s13, 4  ;;  %s1901_s14 = int_to_ptr.vmem [resolvable:$true] %s186_s14 }
  0x26   : > { %p1897_p2 = pnand %p1310_p0, %p2281_p1 }
  0x28   : > { %s1477_s5 = scalar_lea.hbm %s2318_s2, 16  ;;  %p1479_p6 = pneg %p1897_p2 }
  0x29   : > { %p1478_p4 = scmp.ne.s32.totalorder %s2318_s2, %s1477_s5  ;;  %p1484_p10 = scmp.lt.u32.totalorder %s1477_s5, %s2318_s2 }
  0x2b   : > { %p1480_p7 = pnand %p1479_p6, %p1478_p4 }
  0x2d   : > { %p1481_p8 = pneg %p1480_p7 }
  0x2f   : > { %p1486_p12 = pnand %p1484_p10, %p1481_p8 }
  0x31   : > { %1489 = shalt.err (!%p1486_p12)
}
  0x32   : > { %s1490_s4 = scalar_lea.vmem %s177_s12, 16  ;;  %s1497_s9 = scalar_lea.vmem %s177_s12, 32 }
  0x33   : > { %p1491_p0 = scmp.ne.s32.totalorder %s177_s12, %s1490_s4  ;;  %p1498_p9 = scmp.lt.s32.totalorder %s177_s12, %s177_s12 }
  0x34   : > { %p1499_p5 = scmp.lt.s32.totalorder %s1497_s9, %s1490_s4 }
  0x35   : > { %p1493_p1 = pnand %p1491_p0, %p1479_p6 }
  0x36   : > { %p1500_p3 = por %p1499_p5, %p1498_p9 }
  0x37   : > { %p1494_p11 = pneg %p1493_p1 }
  0x39   : > { %p1501_p13 = pnand %p1500_p3, %p1494_p11 }
  0x3b   : > { %1504 = shalt.err (!%p1501_p13)
}
  0x3c   : > { %1313 = dma.hbm_to_vmem [thread:$0]  (!%p1897_p2), %s2318_s2, 16, %s177_s12, [#allocation7]  }
  0x3d   : > { %s2319_s3 = sld [smem:[#allocation27_spill]] }
  0x43   : > { %s1505_s11 = scalar_lea.hbm %s2319_s3, 1024 }
  0x44   : > { %p1506_p1 = scmp.ne.s32.totalorder %s2319_s3, %s1505_s11  ;;  %p1512_p9 = scmp.lt.u32.totalorder %s1505_s11, %s2319_s3 }
  0x46   : > { %p1508_p5 = pnand %p1506_p1, %p1479_p6 }
  0x48   : > { %p1509_p3 = pneg %p1508_p5 }
  0x4a   : > { %p1514_p11 = pnand %p1512_p9, %p1509_p3 }
  0x4c   : > { %1517 = shalt.err (!%p1514_p11)
}
  0x4d   : > { %s1518_s12 = scalar_lea.vmem %s1901_s14, 1024  ;;  %p1526_p8 = scmp.lt.s32.totalorder %s1901_s14, %s1901_s14 }
  0x4e   : > { %p1519_p13 = scmp.ne.s32.totalorder %s1901_s14, %s1518_s12  ;;  %p1527_p10 = scmp.lt.s32.totalorder %s1518_s12, %s1518_s12 }
  0x50   : > { %p1521_p4 = pnand %p1519_p13, %p1479_p6  ;;  %p1528_p12 = por %p1527_p10, %p1526_p8 }
  0x52   : > { %p1522_p7 = pneg %p1521_p4 }
  0x54   : > { %p1529_p0 = pnand %p1528_p12, %p1522_p7 }
  0x56   : > { %1532 = shalt.err (!%p1529_p0)
}
  0x57   : > { %s2288_s8 = smov 64   ;;  %s2290_s21 = smov 4  }
  0x58   : > { %1316 = dma.hbm_to_vmem [thread:$0]  (!%p1897_p2), %s2319_s3, 1024, %s1901_s14, [#allocation10], %s2288_s8, %s2288_s8, %s2290_s21  }
  0x59   : > { %s33_s30 = sadd.s32 1, %s1743_s26  ;;  %s36_s11 = sadd.s32 1, %s1747_s27 }
  0x5a   : > { %p34_p6 = scmp.ge.s32.totalorder %s33_s30, 2  ;;  %s45_s13 = sadd.s32 1, %s1731_s23 }
  0x5b   : > { %p52_p1 = scmp.ne.s32.totalorder %s1731_s23, %s1727_s22  ;;  %p2300_p5 = scmp.eq.s32.totalorder %s1751_s28, 0 }
  0x5c   : > { %s2366_s30 = smov (%p34_p6, %s33_s30), 0  ;;  %s2368_s11 = smov (!%p34_p6, %s36_s11), %s1747_s27 }
  0x5d   : > { %2320 = sst [smem:[#allocation25_spill]] %s2366_s30  ;;  %s1964_s18 = ssub.s32 %s1743_s26, %s2366_s30 }
  0x5e   : > { %p1968_p2 = por %p2300_p5, %p52_p1  ;;  %p38_p3 = scmp.ge.s32.totalorder %s2368_s11, 2 }
  0x5f   : > { %p69_p9 = scmp.eq.s32.totalorder %s1964_s18, 0  ;;  %p2299_p11 = scmp.lt.s32.totalorder %s1751_s28, 4 }
  0x60   : > { %s200_s4 = sand.u32 1, %s1731_s23   ;;  %s2370_s11 = smov (%p38_p3, %s2368_s11), 0 }
  0x61   : > { %s1040_s9 = sshll.u32 %s200_s4, 6  ;;  %s40_s12 = ssub.s32 %s1747_s27, %s2370_s11 }
  0x62   : > { %s42_s15 = sor.u32 %s1964_s18, %s40_s12  ;;  %p137_p13 = scmp.eq.s32.totalorder %s40_s12, 0 }
  0x63   : > { %p43_p4 = scmp.eq.s32.totalorder %s42_s15, 0  ;;  %s1102_s5 = sshll.u32 %s1747_s27, 5 }
  0x64   : > { %s2322_s8 = sadd.s32 1, %s1707_s17  ;;  %s210_s3 = sadd.s32 %s1743_s26, %s1102_s5 }
  0x65   : > { %s1984_s21 = scalar_select %p137_p13, %s1707_s17, %s2322_s8  }
  0x66   : > { %s1987_s2 = scalar_select %p43_p4, %s1731_s23, %s45_s13  }
  0x67   : > { %s204_s30 = scalar_lea.vmem [#allocation3], %s1040_s9  ;;  %s1043_s24 = sshll.u32 %s210_s3, 6 }
  0x68   : > { %s213_s25 = sshll.u32 %s204_s30, 4  ;;  %s1995_s29 = scalar_lea.hbm %s2273_s0, %s1043_s24  ;;  %s1990_s25 = int_to_ptr.vmem [resolvable:$true] %s213_s25 }
  0x69   : > { %p2001_p7 = pnand %p2299_p11, %p1968_p2  ;;  %s2005_s3 = scalar_lea.sflag [#allocation4], %s200_s4 }
  0x6a   : > { %s1533_s30 = scalar_lea.hbm %s1995_s29, 1024  ;;  %s1538_s7 = scalar_lea.hbm %s2273_s0, 4096 }
  0x6b   : > { %p1534_p8 = scmp.ne.s32.totalorder %s1995_s29, %s1533_s30  ;;  %p1535_p10 = pneg %p2001_p7 }
  0x6c   : > { %p1539_p6 = scmp.lt.u32.totalorder %s1995_s29, %s2273_s0  ;;  %p1540_p1 = scmp.lt.u32.totalorder %s1538_s7, %s1533_s30 }
  0x6d   : > { %p1536_p12 = pnand %p1535_p10, %p1534_p8  ;;  %p1542_p3 = scmp.lt.u32.totalorder %s1533_s30, %s1995_s29 }
  0x6e   : > { %p1541_p2 = por %p1540_p1, %p1539_p6 }
  0x6f   : > { %p1537_p0 = pneg %p1536_p12 }
  0x70   : > { %p1543_p13 = por %p1542_p3, %p1541_p2 }
  0x72   : > { %p1544_p4 = pnand %p1543_p13, %p1537_p0 }
  0x74   : > { %1547 = shalt.err (!%p1544_p4)
}
  0x75   : > { %s1548_s4 = scalar_lea.vmem %s1990_s25, 1024  ;;  %s1757_s9 = smov [#allocation3]  }
  0x76   : > { %p1549_p8 = scmp.ne.s32.totalorder %s1990_s25, %s1548_s4  ;;  %s1553_s12 = sshll.u32 %s1757_s9, 4  ;;  %s1554_s12 = int_to_ptr.vmem [resolvable:$false] %s1553_s12 }
  0x77   : > { %s1555_s15 = scalar_lea.vmem %s1554_s12, 2048  ;;  %p1556_p5 = scmp.lt.s32.totalorder %s1990_s25, %s1554_s12 }
  0x78   : > { %p1551_p12 = pnand %p1549_p8, %p1535_p10  ;;  %p1557_p6 = scmp.lt.s32.totalorder %s1555_s15, %s1548_s4 }
  0x7a   : > { %p1552_p11 = pneg %p1551_p12  ;;  %p1558_p1 = por %p1557_p6, %p1556_p5 }
  0x7c   : > { %p1559_p2 = pnand %p1558_p1, %p1552_p11 }
  0x7e   : > { %1562 = shalt.err (!%p1559_p2)
}
  0x7f   : > { %s1758_s5 = smov 128   ;;  %s2324_s30 = smov 4  }
  0x80   : > { %s2325_s16 = smov 64   ;;  %s71_s24 = sadd.s32 1, %s1719_s20 }
  0x81   : > { %1320 = dma.hbm_to_vmem [thread:$0]  (!%p2001_p7), %s1995_s29, 1024, %s1990_s25, %s2005_s3, %s1758_s5, %s2325_s16, %s2324_s30  }
  0x82   : > { %p78_p5 = scmp.ne.s32.totalorder %s1719_s20, %s1715_s19  ;;  %p2326_p11 = scmp.eq.s32.totalorder %s1751_s28, 0 }
  0x83   : > { %s2041_s8 = scalar_select %p69_p9, %s1719_s20, %s71_s24  }
  0x84   : > { %p80_p10 = por %p78_p5, %p2326_p11  ;;  %s223_s7 = sand.u32 1, %s1751_s28  }
  0x85   : > { %s225_s13 = sand.u32 1, %s1719_s20   ;;  %s1103_s4 = sshll.u32 %s1743_s26, 10 }
  0x86   : > { %s1044_s14 = sshll.u32 %s225_s13, 6  ;;  %s2051_s15 = scalar_lea.hbm %s2274_s1, %s1103_s4 }
  0x87   : > { %s227_s25 = scalar_lea.vmem [#allocation6], %s1044_s14  ;;  %p2327_p7 = scmp.lt.s32.totalorder %s1751_s28, 4 }
  0x88   : > { %s234_s29 = sshll.u32 %s227_s25, 4  ;;  %s2061_s3 = scalar_lea.sflag [#allocation7], %s223_s7  ;;  %s2059_s29 = int_to_ptr.vmem [resolvable:$true] %s234_s29 }
  0x89   : > { %p2055_p9 = pnand %p2327_p7, %p80_p10  ;;  %s1563_s5 = scalar_lea.hbm %s2051_s15, 1024 }
  0x8a   : > { %p1564_p0 = scmp.ne.s32.totalorder %s2051_s15, %s1563_s5  ;;  %s1568_s14 = scalar_lea.hbm %s2274_s1, 2048 }
  0x8b   : > { %p1565_p3 = pneg %p2055_p9  ;;  %p1569_p8 = scmp.lt.u32.totalorder %s2051_s15, %s2274_s1 }
  0x8c   : > { %p1570_p12 = scmp.lt.u32.totalorder %s1568_s14, %s1563_s5  ;;  %p1572_p1 = scmp.lt.u32.totalorder %s1563_s5, %s2051_s15 }
  0x8d   : > { %p1566_p13 = pnand %p1565_p3, %p1564_p0 }
  0x8e   : > { %p1571_p6 = por %p1570_p12, %p1569_p8 }
  0x8f   : > { %p1567_p4 = pneg %p1566_p13 }
  0x90   : > { %p1573_p2 = por %p1572_p1, %p1571_p6 }
  0x92   : > { %p1574_p5 = pnand %p1573_p2, %p1567_p4 }
  0x94   : > { %1577 = shalt.err (!%p1574_p5)
}
  0x95   : > { %s1578_s7 = scalar_lea.vmem %s2059_s29, 1024  ;;  %s1759_s12 = smov [#allocation6]  }
  0x96   : > { %p1579_p11 = scmp.ne.s32.totalorder %s2059_s29, %s1578_s7  ;;  %s1583_s25 = sshll.u32 %s1759_s12, 4  ;;  %s1584_s25 = int_to_ptr.vmem [resolvable:$false] %s1583_s25 }
  0x97   : > { %s1585_s24 = scalar_lea.vmem %s1584_s25, 2048  ;;  %p1586_p0 = scmp.lt.s32.totalorder %s2059_s29, %s1584_s25 }
  0x98   : > { %p1581_p10 = pnand %p1579_p11, %p1565_p3  ;;  %p1587_p13 = scmp.lt.s32.totalorder %s1585_s24, %s1578_s7 }
  0x9a   : > { %p1582_p7 = pneg %p1581_p10  ;;  %p1588_p8 = por %p1587_p13, %p1586_p0 }
  0x9c   : > { %p1589_p12 = pnand %p1588_p8, %p1582_p7 }
  0x9e   : > { %1592 = shalt.err (!%p1589_p12)
}
  0x9f   : > { %1323 = dma.hbm_to_vmem [thread:$0]  (!%p2055_p9), %s2051_s15, 1024, %s2059_s29, %s2061_s3, %s2325_s16, %s2325_s16, %s2324_s30  }
  0xa0   : > { %p2329_p3 = scmp.ne.s32.totalorder %s2316_s10, 0 }
  0xa1   : > { %s248_s5 = sand.u32 (!%p2329_p3), 1, %s1727_s22   ;;  %p2330_p4 = scmp.ne.s32.totalorder (!%p2329_p3), %s2309_s6, 0 }
  0xa2   : > { %246 = sbr.rel (%p2329_p3) target bundleno = 755 (0x2f3), region = 36  ;;  %s1048_s13 = sshll.u32 (!%p2329_p3), %s248_s5, 6 }
  0xa3   : > { %s249_s14 = scalar_lea.sflag (!%p2329_p3), [#allocation4], %s248_s5  ;;  %s2095_s4 = scalar_lea.vmem (!%p2329_p3), [#allocation3], %s1048_s13 }
  0xa9   : > { %1678 = dma.done.wait (%p2330_p4), %s249_s14, 1024  }
  0xaa   : > { %1680 = vsyncadd (%p2330_p4), %s249_s14, 4294966272  ;;  %s2331_s18 = sld [smem:[#allocation21_spill]]  ;;  %s2332_s9 = sld [smem:[#allocation22_spill]] }
  0xab   : > { %s259_s30 = sand.u32 1, %s1715_s19  }
  0xac   : > { %s1049_s16 = sshll.u32 %s259_s30, 6 }
  0xad   : > { %s2103_s15 = scalar_lea.vmem [#allocation6], %s1049_s16 }
  0xb0   : > { %s257_s7 = sand.u32 1, %s2331_s18   ;;  %p2333_p9 = scmp.ne.s32.totalorder %s2332_s9, 0 }
  0xb1   : > { %s258_s10 = scalar_lea.sflag [#allocation7], %s257_s7 }
  0xb2   : > { %1682 = dma.done.wait (%p2333_p9), %s258_s10, 1024  }
  0xb3   : > { %1684 = vsyncadd (%p2333_p9), %s258_s10, 4294966272  ;;  %p2334_p6 = scmp.eq.s32.totalorder %s2331_s18, 0 }
  0xb5   : > { %1686 = dma.done.wait (%p2334_p6), [#allocation7], 16   ;;  %p2335_p1 = pmov %p2334_p6 }
  0xb7   : > { %1688 = vsyncadd (%p2335_p1), [#allocation7], 4294967280  ;;  %p2336_p2 = pmov %p2335_p1 }
  0xb8   : > { %p2337_p5 = pmov %p2335_p1 }
  0xb9   : > { %1690 = dma.done.wait (%p2336_p2), [#allocation10], 1024  }
  0xba   : > { %1692 = vsyncadd (%p2337_p5), [#allocation10], 4294966272  ;;  %s2338_s6 = sld [smem:[#allocation18_spill]]  ;;  %v1453_v0 = vld [vmem:[%s2103_s15] sm:$0xff]   ;;  %v1454_v1 = vld [vmem:[%s2103_s15 + $0x8] sm:$0xff]   ;;  %s2339_s25 = sld [smem:[#allocation19_spill]] }
  0xbb   : > { %1200 = vmatprep.subr.bf16.mxu0 %v1453_v0  ;;  %1264 = vmatprep.subr.bf16.mxu1 %v1453_v0  ;;  %v1455_v2 = vld [vmem:[%s2103_s15 + $0x10] sm:$0xff]   ;;  %v1456_v3 = vld [vmem:[%s2103_s15 + $0x18] sm:$0xff]   ;;  %v1461_v4 = vld [vmem:[%s2095_s4] sm:$0xff]  }
  0xbc   : > { %1201 = vmatpush3.bf16.msra.mxu0 %v1453_v0  ;;  %1272 = vmatpush3.bf16.msra.mxu1 %v1453_v0  ;;  %v1462_v5 = vld [vmem:[%s2095_s4 + $0x20] sm:$0xff]   ;;  %v1458_v7 = vld [vmem:[%s2103_s15 + $0x28] sm:$0xff]   ;;  %v1459_v8 = vld [vmem:[%s2103_s15 + $0x30] sm:$0xff]  }
  0xbd   : > { %1202 = vmatprep.subr.bf16.mxu0 %v1454_v1  ;;  %1265 = vmatprep.subr.bf16.mxu1 %v1454_v1  ;;  %v1457_v6 = vld [vmem:[%s2103_s15 + $0x20] sm:$0xff]   ;;  %v1460_v9 = vld [vmem:[%s2103_s15 + $0x38] sm:$0xff]   ;;  %v1463_v10 = vld [vmem:[%s2095_s4 + $0x8] sm:$0xff]  }
  0xbe   : > { %1216 = vmatprep.mubr.bf16.mxu0 %v1461_v4  ;;  %1224 = vmatprep.mubr.bf16.mxu1 %v1462_v5  ;;  %v1464_v11 = vld [vmem:[%s2095_s4 + $0x28] sm:$0xff]   ;;  %v1465_v12 = vld [vmem:[%s2095_s4 + $0x10] sm:$0xff]   ;;  %v1467_v14 = vld [vmem:[%s2095_s4 + $0x18] sm:$0xff]  }
  0xbf   : > { %v1466_v13 = vld [vmem:[%s2095_s4 + $0x30] sm:$0xff]   ;;  %v1468_v15 = vld [vmem:[%s2095_s4 + $0x38] sm:$0xff]  }
  0xc0   : > { %s296_s29 = sand.u32 1, %s2338_s6   ;;  %1203 = vmatpush3.bf16.msra.mxu0 %v1454_v1  ;;  %1273 = vmatpush3.bf16.msra.mxu1 %v1454_v1  ;;  %p1069_p11 = scmp.ne.s32.totalorder %s2339_s25, 0 }
  0xc1   : > { %s2120_s3 = sshll.u32 %s296_s29, 6  ;;  %1204 = vmatprep.subr.bf16.mxu0 %v1455_v2  ;;  %1266 = vmatprep.subr.bf16.mxu1 %v1455_v2 }
  0xc2   : > { %s2147_s12 = scalar_lea.vmem [#allocation11], %s2120_s3 }
  0xc4   : > { %1205 = vmatpush3.bf16.msra.mxu0 %v1455_v2  ;;  %1274 = vmatpush3.bf16.msra.mxu1 %v1455_v2 }
  0xc5   : > { %1206 = vmatprep.subr.bf16.mxu0 %v1456_v3  ;;  %1267 = vmatprep.subr.bf16.mxu1 %v1456_v3 }
  0xc8   : > { %1207 = vmatpush3.bf16.msra.mxu0 %v1456_v3  ;;  %1275 = vmatpush3.bf16.msra.mxu1 %v1456_v3 }
  0xc9   : > { %1208 = vmatprep.subr.bf16.mxu0 %v1457_v6  ;;  %1268 = vmatprep.subr.bf16.mxu1 %v1457_v6 }
  0xcc   : > { %1209 = vmatpush3.bf16.msra.mxu0 %v1457_v6  ;;  %1276 = vmatpush3.bf16.msra.mxu1 %v1457_v6 }
  0xcd   : > { %1210 = vmatprep.subr.bf16.mxu0 %v1458_v7  ;;  %1269 = vmatprep.subr.bf16.mxu1 %v1458_v7 }
  0xd0   : > { %1211 = vmatpush3.bf16.msra.mxu0 %v1458_v7  ;;  %1277 = vmatpush3.bf16.msra.mxu1 %v1458_v7 }
  0xd1   : > { %1212 = vmatprep.subr.bf16.mxu0 %v1459_v8  ;;  %1270 = vmatprep.subr.bf16.mxu1 %v1459_v8 }
  0xd4   : > { %1213 = vmatpush3.bf16.msra.mxu0 %v1459_v8  ;;  %1278 = vmatpush3.bf16.msra.mxu1 %v1459_v8 }
  0xd5   : > { %1214 = vmatprep.subr.bf16.mxu0 %v1460_v9  ;;  %1271 = vmatprep.subr.bf16.mxu1 %v1460_v9 }
  0xd8   : > { %1215 = vmatpush3.bf16.msra.mxu0 %v1460_v9  ;;  %1279 = vmatpush3.bf16.msra.mxu1 %v1460_v9 }
  0xdb   : > { %1217 = vmatmul.mubr.bf16.vlgmr.msra.gmra.mrb[0].mxu0 %v1463_v10  ;;  %1225 = vmatmul.mubr.bf16.vlgmr.msra.gmra.mrb[0].mxu1 %v1464_v11 }
  0xdc   : > { %1220 = vmatprep.mubr.bf16.mxu0 %v1465_v12  ;;  %1228 = vmatprep.mubr.bf16.mxu1 %v1466_v13 }
  0xe3   : > { %1221 = vmatmul.mubr.bf16.gmra.mrb[4].mxu0 %v1467_v14  ;;  %1229 = vmatmul.mubr.bf16.gmra.mrb[4].mxu1 %v1468_v15 }
 0x1ae   : > { %v1218_v16 = vpop.f32.mrb[0].mxu0  ;;  %v2138_v17 = vpop.f32.mrb[0].mxu1 }
 0x1af   : > { %v465_v18 = vpop.f32.mrb[1].mxu0  ;;  %v497_v19 = vpop.f32.mrb[1].mxu1  ;;  %534 = vst [vmem:[#allocation2 + $0x10] sm:$0xff] (!%p1069_p11), %v1218_v16  ;;  %542 = vst [vmem:[#allocation2 + $0x50] sm:$0xff] (!%p1069_p11), %v2138_v17 }
 0x1b0   : > { %v1219_v20 = vpop.f32.mrb[2].mxu0  ;;  %v1227_v21 = vpop.f32.mrb[2].mxu1  ;;  %532 = vst [vmem:[#allocation2] sm:$0xff] (!%p1069_p11), %v465_v18  ;;  %540 = vst [vmem:[#allocation2 + $0x40] sm:$0xff] (!%p1069_p11), %v497_v19 }
 0x1b1   : > { %v468_v22 = vpop.f32.mrb[3].mxu0  ;;  %v500_v23 = vpop.f32.mrb[3].mxu1  ;;  %535 = vst [vmem:[#allocation2 + $0x18] sm:$0xff] (!%p1069_p11), %v1219_v20  ;;  %543 = vst [vmem:[#allocation2 + $0x58] sm:$0xff] (!%p1069_p11), %v1227_v21 }
 0x1b2   : > { %533 = vst [vmem:[#allocation2 + $0x8] sm:$0xff] (!%p1069_p11), %v468_v22  ;;  %541 = vst [vmem:[#allocation2 + $0x48] sm:$0xff] (!%p1069_p11), %v500_v23 }
 0x1b3   : > { %531 = sbr.rel (%p1069_p11) target bundleno = 443 (0x1bb), region = 56 }
 0x1b6   : > { %v1222_v24 = vpop.f32.mrb[4].mxu0  ;;  %v2140_v25 = vpop.f32.mrb[4].mxu1 }
 0x1b7   : > { %v481_v26 = vpop.f32.mrb[5].mxu0  ;;  %v2142_v27 = vpop.f32.mrb[5].mxu1  ;;  %538 = vst [vmem:[#allocation2 + $0x30] sm:$0xff] (!%p1069_p11), %v1222_v24  ;;  %546 = vst [vmem:[#allocation2 + $0x70] sm:$0xff] (!%p1069_p11), %v2140_v25 }
 0x1b8   : > { %v1223_v28 = vpop.f32.mrb[6].mxu0  ;;  %v2144_v29 = vpop.f32.mrb[6].mxu1  ;;  %536 = vst [vmem:[#allocation2 + $0x20] sm:$0xff] (!%p1069_p11), %v481_v26  ;;  %544 = vst [vmem:[#allocation2 + $0x60] sm:$0xff] (!%p1069_p11), %v2142_v27 }
 0x1b9   : > { %v484_v30 = vpop.f32.mrb[7].mxu0  ;;  %v516_v31 = vpop.f32.mrb[7].mxu1  ;;  %539 = vst [vmem:[#allocation2 + $0x38] sm:$0xff] (!%p1069_p11), %v1223_v28  ;;  %547 = vst [vmem:[#allocation2 + $0x78] sm:$0xff] (!%p1069_p11), %v2144_v29 }
 0x1ba   : > { %537 = vst [vmem:[#allocation2 + $0x28] sm:$0xff] %v484_v30  ;;  %545 = vst [vmem:[#allocation2 + $0x68] sm:$0xff] %v516_v31 }
 0x1bb PF: > { %s2340_s24 = sld [smem:[#allocation19_spill]] }
 0x1c1   : > { %p1070_p10 = scmp.le.s32.totalorder %s2340_s24, 0 }
 0x1c2   : > { %v552_v32 = vld [vmem:[#allocation2] sm:$0xff] (!%p1070_p10)  ;;  %v553_v33 = vld [vmem:[#allocation2 + $0x8] sm:$0xff] (!%p1070_p10)  ;;  %v554_v34 = vld [vmem:[#allocation2 + $0x10] sm:$0xff] (!%p1070_p10) }
 0x1c3   : > { %551 = sbr.rel (%p1070_p10) target bundleno = 461 (0x1cd), region = 60  ;;  %v568_v35 = vadd.f32 (!%p1070_p10), %v552_v32, %v465_v18  ;;  %v569_v36 = vadd.f32 (!%p1070_p10), %v553_v33, %v468_v22  ;;  %v570_v37 = vadd.f32 (!%p1070_p10), %v1218_v16, %v554_v34  ;;  %v555_v38 = vld [vmem:[#allocation2 + $0x18] sm:$0xff] (!%p1070_p10)  ;;  %v556_v39 = vld [vmem:[#allocation2 + $0x20] sm:$0xff] (!%p1070_p10)  ;;  %v557_v40 = vld [vmem:[#allocation2 + $0x28] sm:$0xff] (!%p1070_p10) }
 0x1c4   : > { %v571_v41 = vadd.f32 (!%p1070_p10), %v1219_v20, %v555_v38  ;;  %v572_v42 = vadd.f32 (!%p1070_p10), %v556_v39, %v481_v26  ;;  %v573_v43 = vadd.f32 (!%p1070_p10), %v557_v40, %v484_v30  ;;  %v558_v44 = vld [vmem:[#allocation2 + $0x30] sm:$0xff] (!%p1070_p10)  ;;  %v559_v45 = vld [vmem:[#allocation2 + $0x38] sm:$0xff] (!%p1070_p10)  ;;  %v560_v46 = vld [vmem:[#allocation2 + $0x40] sm:$0xff] (!%p1070_p10) }
 0x1c5   : > { %584 = vst [vmem:[#allocation2] sm:$0xff] (!%p1070_p10), %v568_v35  ;;  %585 = vst [vmem:[#allocation2 + $0x8] sm:$0xff] (!%p1070_p10), %v569_v36  ;;  %v574_v47 = vadd.f32 (!%p1070_p10), %v1222_v24, %v558_v44  ;;  %v575_v48 = vadd.f32 (!%p1070_p10), %v1223_v28, %v559_v45  ;;  %v576_v49 = vadd.f32 (!%p1070_p10), %v560_v46, %v497_v19  ;;  %v561_v50 = vld [vmem:[#allocation2 + $0x48] sm:$0xff] (!%p1070_p10)  ;;  %v562_v51 = vld [vmem:[#allocation2 + $0x50] sm:$0xff] (!%p1070_p10) }
 0x1c6   : > { %586 = vst [vmem:[#allocation2 + $0x10] sm:$0xff] (!%p1070_p10), %v570_v37  ;;  %v563_v52 = vld [vmem:[#allocation2 + $0x58] sm:$0xff] (!%p1070_p10)  ;;  %587 = vst [vmem:[#allocation2 + $0x18] sm:$0xff] (!%p1070_p10), %v571_v41  ;;  %v577_v53 = vadd.f32 (!%p1070_p10), %v561_v50, %v500_v23  ;;  %v578_v54 = vadd.f32 (!%p1070_p10), %v2138_v17, %v562_v51  ;;  %v564_v56 = vld [vmem:[#allocation2 + $0x60] sm:$0xff] (!%p1070_p10) }
 0x1c7   : > { %588 = vst [vmem:[#allocation2 + $0x20] sm:$0xff] (!%p1070_p10), %v572_v42  ;;  %589 = vst [vmem:[#allocation2 + $0x28] sm:$0xff] (!%p1070_p10), %v573_v43  ;;  %v579_v55 = vadd.f32 (!%p1070_p10), %v1227_v21, %v563_v52  ;;  %v565_v57 = vld [vmem:[#allocation2 + $0x68] sm:$0xff] (!%p1070_p10)  ;;  %v566_v58 = vld [vmem:[#allocation2 + $0x70] sm:$0xff] (!%p1070_p10)  ;;  %v580_v59 = vadd.f32 (!%p1070_p10), %v564_v56, %v2142_v27 }
 0x1c8   : > { %590 = vst [vmem:[#allocation2 + $0x30] sm:$0xff] (!%p1070_p10), %v574_v47  ;;  %591 = vst [vmem:[#allocation2 + $0x38] sm:$0xff] (!%p1070_p10), %v575_v48  ;;  %v581_v60 = vadd.f32 (!%p1070_p10), %v565_v57, %v516_v31  ;;  %v582_v61 = vadd.f32 (!%p1070_p10), %v2140_v25, %v566_v58  ;;  %v567_v62 = vld [vmem:[#allocation2 + $0x78] sm:$0xff] (!%p1070_p10) }
 0x1c9   : > { %592 = vst [vmem:[#allocation2 + $0x40] sm:$0xff] (!%p1070_p10), %v576_v49  ;;  %593 = vst [vmem:[#allocation2 + $0x48] sm:$0xff] (!%p1070_p10), %v577_v53  ;;  %v583_v63 = vadd.f32 (!%p1070_p10), %v2144_v29, %v567_v62 }
 0x1ca   : > { %594 = vst [vmem:[#allocation2 + $0x50] sm:$0xff] %v578_v54  ;;  %595 = vst [vmem:[#allocation2 + $0x58] sm:$0xff] %v579_v55 }
 0x1cb   : > { %596 = vst [vmem:[#allocation2 + $0x60] sm:$0xff] %v580_v59  ;;  %597 = vst [vmem:[#allocation2 + $0x68] sm:$0xff] %v581_v60 }
 0x1cc   : > { %598 = vst [vmem:[#allocation2 + $0x70] sm:$0xff] %v582_v61  ;;  %599 = vst [vmem:[#allocation2 + $0x78] sm:$0xff] %v583_v63 }
 0x1cd PF: > { %s2341_s5 = sld [smem:[#allocation19_spill]] }
 0x1d3   : > { %p1071_p7 = scmp.ne.s32.totalorder %s2341_s5, 1 }
 0x1d4   : > { %v1469_v0 = vld [vmem:[#allocation9] sm:$0xff] (!%p1071_p7)   ;;  %v1470_v1 = vld [vmem:[#allocation9 + $0x8] sm:$0xff] (!%p1071_p7)   ;;  %v1471_v2 = vld [vmem:[#allocation9 + $0x10] sm:$0xff] (!%p1071_p7)  }
 0x1d5   : > { %603 = sbr.rel (%p1071_p7) target bundleno = 727 (0x2d7), region = 64  ;;  %1232 = vmatprep.subr.bf16.mxu0 (!%p1071_p7), %v1469_v0  ;;  %1280 = vmatprep.subr.bf16.mxu1 (!%p1071_p7), %v1469_v0  ;;  %v1472_v3 = vld [vmem:[#allocation9 + $0x18] sm:$0xff] (!%p1071_p7)   ;;  %v605_v5 = vld [vmem:[#allocation2 + $0x8] sm:$0xff] (!%p1071_p7)  ;;  %v1475_v17 = vld [vmem:[#allocation9 + $0x30] sm:$0xff] (!%p1071_p7)  }
 0x1d6   : > { %1233 = vmatpush3.bf16.msra.mxu0 (!%p1071_p7), %v1469_v0  ;;  %1288 = vmatpush3.bf16.msra.mxu1 (!%p1071_p7), %v1469_v0  ;;  %v604_v4 = vld [vmem:[#allocation2] sm:$0xff] (!%p1071_p7)  ;;  %v613_v10 = vld [vmem:[#allocation2 + $0x48] sm:$0xff] (!%p1071_p7)  ;;  %v606_v19 = vld [vmem:[#allocation2 + $0x10] sm:$0xff] (!%p1071_p7) }
 0x1d7   : > { %1234 = vmatprep.subr.bf16.mxu0 (!%p1071_p7), %v1470_v1  ;;  %1281 = vmatprep.subr.bf16.mxu1 (!%p1071_p7), %v1470_v1  ;;  %v2160_v6 = vld [vmem:[#allocation8] ss:$0 sm:$0xff] (!%p1071_p7)  ;;  %v1473_v14 = vld [vmem:[#allocation9 + $0x20] sm:$0xff] (!%p1071_p7)   ;;  %v1474_v16 = vld [vmem:[#allocation9 + $0x28] sm:$0xff] (!%p1071_p7)  }
 0x1d8   : > { %v627_v7 = vadd.f32 (!%p1071_p7), %v2160_v6, %v604_v4  ;;  %v628_v8 = vadd.f32 (!%p1071_p7), %v2160_v6, %v605_v5  ;;  %v612_v9 = vld [vmem:[#allocation2 + $0x40] sm:$0xff] (!%p1071_p7)  ;;  %v636_v12 = vadd.f32 (!%p1071_p7), %v2160_v6, %v613_v10  ;;  %v607_v20 = vld [vmem:[#allocation2 + $0x18] sm:$0xff] (!%p1071_p7)  ;;  %v614_v21 = vld [vmem:[#allocation2 + $0x50] sm:$0xff] (!%p1071_p7)  ;;  %v629_v27 = vadd.f32 (!%p1071_p7), %v2160_v6, %v606_v19 }
 0x1d9   : > { %v635_v11 = vadd.f32 (!%p1071_p7), %v2160_v6, %v612_v9  ;;  %v1476_v18 = vld [vmem:[#allocation9 + $0x38] sm:$0xff] (!%p1071_p7)   ;;  %v609_v24 = vld [vmem:[#allocation2 + $0x28] sm:$0xff] (!%p1071_p7)  ;;  %v630_v28 = vadd.f32 (!%p1071_p7), %v2160_v6, %v607_v20  ;;  %v637_v29 = vadd.f32 (!%p1071_p7), %v2160_v6, %v614_v21  ;;  %v610_v37 = vld [vmem:[#allocation2 + $0x30] sm:$0xff] (!%p1071_p7) }
 0x1da   : > { %1235 = vmatpush3.bf16.msra.mxu0 (!%p1071_p7), %v1470_v1  ;;  %1289 = vmatpush3.bf16.msra.mxu1 (!%p1071_p7), %v1470_v1  ;;  %v643_v13 = vpack.c.bf16 (!%p1071_p7), %v628_v8, %v627_v7  ;;  %v615_v22 = vld [vmem:[#allocation2 + $0x58] sm:$0xff] (!%p1071_p7)  ;;  %v608_v23 = vld [vmem:[#allocation2 + $0x20] sm:$0xff] (!%p1071_p7)  ;;  %v617_v26 = vld [vmem:[#allocation2 + $0x68] sm:$0xff] (!%p1071_p7)  ;;  %v632_v32 = vadd.f32 (!%p1071_p7), %v2160_v6, %v609_v24  ;;  %v633_v43 = vadd.f32 (!%p1071_p7), %v2160_v6, %v610_v37 }
 0x1db   : > { %1236 = vmatprep.subr.bf16.mxu0 (!%p1071_p7), %v1471_v2  ;;  %1282 = vmatprep.subr.bf16.mxu1 (!%p1071_p7), %v1471_v2  ;;  %v647_v15 = vpack.c.bf16 (!%p1071_p7), %v636_v12, %v635_v11  ;;  %v616_v25 = vld [vmem:[#allocation2 + $0x60] sm:$0xff] (!%p1071_p7)  ;;  %v638_v30 = vadd.f32 (!%p1071_p7), %v2160_v6, %v615_v22  ;;  %v631_v31 = vadd.f32 (!%p1071_p7), %v2160_v6, %v608_v23  ;;  %v611_v40 = vld [vmem:[#allocation2 + $0x38] sm:$0xff] (!%p1071_p7)  ;;  %v618_v41 = vld [vmem:[#allocation2 + $0x70] sm:$0xff] (!%p1071_p7) }
 0x1dc   : > { %1248 = vmatprep.mubr.bf16.mxu0 %v643_v13  ;;  %v639_v33 = vadd.f32 %v2160_v6, %v616_v25  ;;  %v640_v34 = vadd.f32 %v2160_v6, %v617_v26  ;;  %v644_v35 = vpack.c.bf16 %v630_v28, %v629_v27  ;;  %v619_v42 = vld [vmem:[#allocation2 + $0x78] sm:$0xff]  ;;  %v634_v44 = vadd.f32 %v2160_v6, %v611_v40 }
 0x1dd   : > { %1256 = vmatprep.mubr.bf16.mxu1 %v647_v15  ;;  %v648_v36 = vpack.c.bf16 %v638_v30, %v637_v29  ;;  %v645_v38 = vpack.c.bf16 %v632_v32, %v631_v31  ;;  %v641_v45 = vadd.f32 %v2160_v6, %v618_v41  ;;  %v642_v46 = vadd.f32 %v2160_v6, %v619_v42 }
 0x1de   : > { %1237 = vmatpush3.bf16.msra.mxu0 %v1471_v2  ;;  %1290 = vmatpush3.bf16.msra.mxu1 %v1471_v2  ;;  %v649_v39 = vpack.c.bf16 %v640_v34, %v639_v33  ;;  %v646_v47 = vpack.c.bf16 %v634_v44, %v633_v43 }
 0x1df   : > { %1238 = vmatprep.subr.bf16.mxu0 %v1472_v3  ;;  %1283 = vmatprep.subr.bf16.mxu1 %v1472_v3  ;;  %v650_v48 = vpack.c.bf16 %v642_v46, %v641_v45 }
 0x1e2   : > { %1239 = vmatpush3.bf16.msra.mxu0 %v1472_v3  ;;  %1291 = vmatpush3.bf16.msra.mxu1 %v1472_v3 }
 0x1e3   : > { %1240 = vmatprep.subr.bf16.mxu0 %v1473_v14  ;;  %1284 = vmatprep.subr.bf16.mxu1 %v1473_v14 }
 0x1e6   : > { %1241 = vmatpush3.bf16.msra.mxu0 %v1473_v14  ;;  %1292 = vmatpush3.bf16.msra.mxu1 %v1473_v14 }
 0x1e7   : > { %1242 = vmatprep.subr.bf16.mxu0 %v1474_v16  ;;  %1285 = vmatprep.subr.bf16.mxu1 %v1474_v16 }
 0x1ea   : > { %1243 = vmatpush3.bf16.msra.mxu0 %v1474_v16  ;;  %1293 = vmatpush3.bf16.msra.mxu1 %v1474_v16 }
 0x1eb   : > { %1244 = vmatprep.subr.bf16.mxu0 %v1475_v17  ;;  %1286 = vmatprep.subr.bf16.mxu1 %v1475_v17 }
 0x1ee   : > { %1245 = vmatpush3.bf16.msra.mxu0 %v1475_v17  ;;  %1294 = vmatpush3.bf16.msra.mxu1 %v1475_v17 }
 0x1ef   : > { %1246 = vmatprep.subr.bf16.mxu0 %v1476_v18  ;;  %1287 = vmatprep.subr.bf16.mxu1 %v1476_v18 }
 0x1f2   : > { %1247 = vmatpush3.bf16.msra.mxu0 %v1476_v18  ;;  %1295 = vmatpush3.bf16.msra.mxu1 %v1476_v18 }
 0x1f5   : > { %1249 = vmatmul.mubr.bf16.vlgmr.msra.gmra.mrb[0].mxu0 %v644_v35  ;;  %1257 = vmatmul.mubr.bf16.vlgmr.msra.gmra.mrb[0].mxu1 %v648_v36 }
 0x1f6   : > { %1252 = vmatprep.mubr.bf16.mxu0 %v645_v38  ;;  %1260 = vmatprep.mubr.bf16.mxu1 %v649_v39 }
 0x1fd   : > { %1253 = vmatmul.mubr.bf16.gmra.mrb[4].mxu0 %v646_v47  ;;  %1261 = vmatmul.mubr.bf16.gmra.mrb[4].mxu1 %v650_v48 }
 0x2c8   : > { %v1250_v49 = vpop.f32.mrb[0].mxu0  ;;  %v1258_v50 = vpop.f32.mrb[0].mxu1 }
 0x2c9   : > { %v749_v51 = vpop.f32.mrb[1].mxu0  ;;  %v781_v52 = vpop.f32.mrb[1].mxu1 }
 0x2ca   : > { %v1251_v53 = vpop.f32.mrb[2].mxu0  ;;  %v1259_v54 = vpop.f32.mrb[2].mxu1 }
 0x2cb   : > { %v1129_v55 = vpack.c.bf16 %v1251_v53, %v1250_v49  ;;  %v1149_v56 = vpack.c.bf16 %v1259_v54, %v1258_v50  ;;  %v752_v57 = vpop.f32.mrb[3].mxu0  ;;  %v784_v58 = vpop.f32.mrb[3].mxu1 }
 0x2cc   : > { %v1124_v59 = vpack.c.bf16 %v752_v57, %v749_v51  ;;  %v1144_v60 = vpack.c.bf16 %v784_v58, %v781_v52 }
 0x2cd   : > { %1161 = vst [vmem:[%s2147_s12 + $0x8] sm:$0xff] %v1129_v55   ;;  %1165 = vst [vmem:[%s2147_s12 + $0x28] sm:$0xff] %v1149_v56  }
 0x2ce   : > { %1125 = vst [vmem:[%s2147_s12] sm:$0xff] %v1124_v59   ;;  %1164 = vst [vmem:[%s2147_s12 + $0x20] sm:$0xff] %v1144_v60  }
 0x2d0   : > { %v1254_v61 = vpop.f32.mrb[4].mxu0  ;;  %v1262_v62 = vpop.f32.mrb[4].mxu1 }
 0x2d1   : > { %v765_v63 = vpop.f32.mrb[5].mxu0  ;;  %v797_v0 = vpop.f32.mrb[5].mxu1 }
 0x2d2   : > { %v1255_v1 = vpop.f32.mrb[6].mxu0  ;;  %v1263_v2 = vpop.f32.mrb[6].mxu1 }
 0x2d3   : > { %v1139_v3 = vpack.c.bf16 %v1255_v1, %v1254_v61  ;;  %v1159_v4 = vpack.c.bf16 %v1263_v2, %v1262_v62  ;;  %v768_v5 = vpop.f32.mrb[7].mxu0  ;;  %v800_v6 = vpop.f32.mrb[7].mxu1 }
 0x2d4   : > { %v1134_v7 = vpack.c.bf16 %v768_v5, %v765_v63  ;;  %v1154_v8 = vpack.c.bf16 %v800_v6, %v797_v0 }
 0x2d5   : > { %1163 = vst [vmem:[%s2147_s12 + $0x18] sm:$0xff] %v1139_v3   ;;  %1167 = vst [vmem:[%s2147_s12 + $0x38] sm:$0xff] %v1159_v4  }
 0x2d6   : > { %1162 = vst [vmem:[%s2147_s12 + $0x10] sm:$0xff] %v1134_v7   ;;  %1166 = vst [vmem:[%s2147_s12 + $0x30] sm:$0xff] %v1154_v8  }
 0x2d7 PF: > { %s2342_s13 = sld [smem:[#allocation20_spill]]  ;;  %s2344_s4 = sld [smem:[#allocation23_spill]] }
 0x2d8   : > { %s2345_s30 = sld [smem:[#allocation28_spill]]  ;;  %s906_s10 = sshll.u32 %s2147_s12, 4  ;;  %s2193_s10 = int_to_ptr.vmem [resolvable:$true] %s906_s10 }
 0x2d9   : > { %s2197_s15 = scalar_lea.sflag [#allocation5], %s296_s29  ;;  %s1593_s6 = scalar_lea.vmem %s2193_s10, 1024 }
 0x2da   : > { %p1594_p0 = scmp.ne.s32.totalorder %s2193_s10, %s1593_s6  ;;  %s1760_s3 = smov [#allocation11]  }
 0x2db   : > { %s1597_s25 = sshll.u32 %s1760_s3, 4  ;;  %s1598_s25 = int_to_ptr.vmem [resolvable:$false] %s1597_s25 }
 0x2dc   : > { %s1599_s24 = scalar_lea.vmem %s1598_s25, 2048  ;;  %p1600_p3 = scmp.lt.s32.totalorder %s2193_s10, %s1598_s25 }
 0x2dd   : > { %s1120_s18 = sshll.u32 %s2342_s13, 10  ;;  %p2346_p13 = scmp.ne.s32.totalorder %s2344_s4, 0 }
 0x2de   : > { %s2190_s16 = scalar_lea.hbm %s2345_s30, %s1120_s18  ;;  %p1601_p4 = scmp.lt.s32.totalorder %s1599_s24, %s1593_s6 }
 0x2df   : > { %p1595_p8 = pnand %p1594_p0, %p2346_p13 }
 0x2e0   : > { %p1602_p9 = por %p1601_p4, %p1600_p3 }
 0x2e1   : > { %p1596_p12 = pneg %p1595_p8 }
 0x2e3   : > { %p1603_p6 = pnand %p1602_p9, %p1596_p12 }
 0x2e5   : > { %1606 = shalt.err (!%p1603_p6)
}
 0x2e6   : > { %s1607_s29 = scalar_lea.hbm %s2190_s16, 1024  ;;  %s1611_s13 = scalar_lea.hbm %s2345_s30, 2048 }
 0x2e7   : > { %p1608_p1 = scmp.ne.s32.totalorder %s2190_s16, %s1607_s29  ;;  %p1612_p11 = scmp.lt.u32.totalorder %s2190_s16, %s2345_s30 }
 0x2e8   : > { %p1613_p10 = scmp.lt.u32.totalorder %s1611_s13, %s1607_s29  ;;  %p1615_p0 = scmp.lt.u32.totalorder %s1607_s29, %s2190_s16 }
 0x2e9   : > { %p1609_p2 = pnand %p1608_p1, %p2346_p13 }
 0x2ea   : > { %p1614_p7 = por %p1613_p10, %p1612_p11 }
 0x2eb   : > { %p1610_p5 = pneg %p1609_p2 }
 0x2ec   : > { %p1616_p8 = por %p1615_p0, %p1614_p7 }
 0x2ee   : > { %p1617_p12 = pnand %p1616_p8, %p1610_p5 }
 0x2f0   : > { %1620 = shalt.err (!%p1617_p12)
}
 0x2f1   : > { %s1761_s9 = smov 64   ;;  %s1762_s7 = smov 4  }
 0x2f2   : > { %1308 = dma.vmem_to_hbm [thread:$0]  (%p2346_p13), %s2193_s10, 1024, %s2190_s16, %s2197_s15, %s1761_s9, %s1761_s9, %s1762_s7  }
 0x2f3 PF: > { %s2347_s6 = sld [smem:[#allocation17_spill]]  ;;  %s2348_s3 = sld [smem:[#allocation24_spill]] }
 0x2f4   : > { %p1333_p3 = scmp.ge.s32.totalorder %s1751_s28, 2 }
 0x2f9   : > { %s921_s25 = sand.u32 1, %s2347_s6   ;;  %p2349_p4 = scmp.ne.s32.totalorder %s2348_s3, 0 }
 0x2fa   : > { %s922_s24 = scalar_lea.sflag [#allocation5], %s921_s25 }
 0x2fb   : > { %p1325_p9 = pnand %p1333_p3, %p2349_p4 }
 0x2fd   : > { %1694 = dma.done.wait (!%p1325_p9), %s922_s24, 1024  }
 0x2fe   : > { %1696 = vsyncadd (!%p1325_p9), %s922_s24, 4294966272  ;;  %s24_s28 = sadd.s32 1, %s1751_s28   ;;  %s2351_s15 = sld [smem:[#allocation18_spill]] }
 0x2ff   : > { %p2226_p6 = scmp.ge.s32.totalorder %s24_s28, 6   ;;  %s2352_s4 = sld [smem:[#allocation25_spill]] }
 0x300   : > { %s2353_s16 = smov %s1707_s17  ;;  %s2354_s17 = smov %s1984_s21 }
 0x301   : > { %s2355_s18 = smov %s1715_s19  ;;  %s2356_s19 = smov %s1719_s20 }
 0x302   : > { %s2357_s20 = smov %s2041_s8  ;;  %s2358_s21 = smov %s1727_s22 }
 0x303   : > { %s2359_s22 = smov %s1731_s23  ;;  %s2360_s23 = smov %s1987_s2 }
 0x304   : > { %s2361_s24 = smov %s1743_s26  ;;  %s2362_s25 = smov %s1747_s27 }
 0x305   : > { %s2363_s26 = smov %s2352_s4  ;;  %s2364_s27 = smov %s2370_s11 }
 0x306   :  { %23 = sbr.rel (!%p2226_p6) target bundleno = 17 (0x11), region = 114 }
 0x30d   :  { %927 = vsyncpa [#allocation4], 1 }
 0x30e   :  { %929 = vsyncpa [#allocation4 + $0x1], 1 }
 0x30f   :  { %930 = vsyncpa [#allocation7], 1 }
 0x310   :  { %932 = vsyncpa [#allocation7 + $0x1], 1 }
 0x311   :  { %933 = vsyncpa [#allocation10], 1 }
 0x312   :  { %934 = vsyncpa [#allocation5], 1 }
 0x313   :  { %936 = vsyncpa [#allocation5 + $0x1], 1 }

// kernel: bigi_forward.11
= control target key start
LH: loop header
LB: loop body
LE: loop exit
PB: predicated region body
PF: predicated region fallthrough
CT: control target
= control target key end

     0   :  { %s3090_s0 = inlined_call_operand.hbm [shape: bf16[256,256], index: 0, kind: input, shape index: {}]   ;;  %s3091_s1 = inlined_call_operand.hbm [shape: bf16[256,128], index: 1, kind: input, shape index: {}]   ;;  %s3092_s2 = inlined_call_operand.hbm [shape: bf16[256,128], index: 2, kind: input, shape index: {}]   ;;  %s3093_s3 = inlined_call_operand.hbm [shape: f32[1,128], index: 3, kind: input, shape index: {}]   ;;  %s3094_s4 = inlined_call_operand.hbm [shape: bf16[128,128], index: 4, kind: input, shape index: {}]   ;;  %s3095_s5 = inlined_call_operand.hbm [shape: bf16[128,128], index: 5, kind: input, shape index: {}]   ;;  %s3096_s6 = inlined_call_operand.hbm [shape: f32[1,128], index: 6, kind: input, shape index: {}]   ;;  %s3097_s7 = inlined_call_operand.hbm [shape: bf16[256,128], index: 7, kind: output, shape index: {}]  }
   0x1   :  { %3120 = sst [smem:[#allocation32_spill]] %s3090_s0 }
   0x2   :  { %3121 = sst [smem:[#allocation33_spill]] %s3091_s1 }
   0x3   :  { %3122 = sst [smem:[#allocation34_spill]] %s3092_s2 }
   0x4   :  { %3123 = sst [smem:[#allocation35_spill]] %s3093_s3 }
   0x5   :  { %3124 = sst [smem:[#allocation36_spill]] %s3095_s5 }
   0x6   :  { %3125 = sst [smem:[#allocation37_spill]] %s3097_s7 }
   0x7   :  { %12 = vsyncpa [#allocation4], 0 }
   0x8   :  { %14 = vsyncpa [#allocation4 + $0x1], 0 }
   0x9   :  { %15 = vsyncpa [#allocation7], 0 }
   0xa   :  { %17 = vsyncpa [#allocation7 + $0x1], 0 }
   0xb   :  { %18 = vsyncpa [#allocation10], 0 }
   0xc   :  { %19 = vsyncpa [#allocation13], 0 }
   0xd   :  { %20 = vsyncpa [#allocation5], 0 }
   0xe   :  { %22 = vsyncpa [#allocation5 + $0x1], 0  ;;  %s2460_s24 = smov 0   ;;  %s2462_s25 = smov 0  }
   0xf   :  { %s2464_s26 = smov 0   ;;  %s2466_s27 = smov 0  }
  0x10   :  { %s2468_s28 = smov 0   ;;  %s2470_s29 = smov 0  }
  0x11   :  { %s2472_s30 = smov 0   ;;  %s2474_s8 = smov 0  }
  0x12   :  { %s2476_s9 = smov 0   ;;  %s2478_s10 = smov 0  }
  0x13   :  { %s2480_s11 = smov 0   ;;  %s2482_s12 = smov 0  }
  0x14   :  { %s2484_s13 = smov 0   ;;  %s2486_s14 = smov 0  }
  0x15 LB: > { %3126 = sst [smem:[#allocation22_spill]] %s2353_s24  ;;  %s2531_s15 = sadd.s32 4294967295, %s2405_s14   ;;  %s2405_s14 = sphi %s2486_s14, %s28_s14   ;;  %s2401_s13 = sphi %s2484_s13, %s3204_s13   ;;  %s2397_s12 = sphi %s2482_s12, %s3203_s12   ;;  %s2393_s11 = sphi %s2480_s11, %s3202_s11   ;;  %s2389_s10 = sphi %s2478_s10, %s3201_s10   ;;  %s2385_s9 = sphi %s2476_s9, %s3200_s9   ;;  %s2381_s8 = sphi %s2474_s8, %s3199_s8   ;;  %s2377_s30 = sphi %s2472_s30, %s3198_s30   ;;  %s2373_s29 = sphi %s2470_s29, %s3192_s29   ;;  %s2369_s28 = sphi %s2468_s28, %s3191_s28   ;;  %s2365_s27 = sphi %s2466_s27, %s3190_s27   ;;  %s2361_s26 = sphi %s2464_s26, %s3197_s26   ;;  %s2357_s25 = sphi %s2462_s25, %s3196_s25   ;;  %s2353_s24 = sphi %s2460_s24, %s3195_s24  }
  0x16   : > { %3127 = sst [smem:[#allocation23_spill]] %s2369_s28  ;;  %p1485_p0 = scmp.ge.s32.totalorder %s2405_s14, 1 }
  0x17   : > { %3128 = sst [smem:[#allocation24_spill]] %s2373_s29  ;;  %p3100_p1 = scmp.eq.s32.totalorder %s2531_s15, 0 }
  0x18   : > { %3129 = sst [smem:[#allocation25_spill]] %s2389_s10  ;;  %p235_p3 = scmp.lt.s32.totalorder %s2405_s14, 5 }
  0x19   : > { %3130 = sst [smem:[#allocation26_spill]] %s2393_s11  ;;  %s2407_s17 = smov [#allocation9]  }
  0x1a   : > { %p2537_p4 = pnand %p1485_p0, %p235_p3  ;;  %s248_s18 = sshll.u32 %s2407_s17, 4  ;;  %s249_s18 = int_to_ptr.vmem [resolvable:$true] %s248_s18 }
  0x1b   : > { %s2408_s20 = smov [#allocation12]   ;;  %s3134_s3 = sld [smem:[#allocation35_spill]] }
  0x1c   : > { %s3131_s16 = scalar_select %p2537_p4, 1, 0 }
  0x1d   : > { %p1843_p5 = pneg %p2537_p4  ;;  %s271_s21 = sshll.u32 %s2408_s20, 4  ;;  %s2549_s21 = int_to_ptr.vmem [resolvable:$true] %s271_s21 }
  0x1e   : > { %3132 = sst [smem:[#allocation27_spill]] %s3131_s16 }
  0x1f   : > { %p2545_p6 = pnand %p1843_p5, %p3100_p1 }
  0x21   : > { %s3133_s19 = scalar_select %p2545_p6, 1, 0 }
  0x22   : > { %s2041_s7 = scalar_lea.hbm %s3134_s3, 16  ;;  %p2559_p8 = pneg %p2545_p6 }
  0x23   : > { %p2042_p7 = scmp.ne.s32.totalorder %s3134_s3, %s2041_s7  ;;  %p2048_p11 = scmp.lt.u32.totalorder %s2041_s7, %s3134_s3 }
  0x25   : > { %p2044_p9 = pnand %p2559_p8, %p2042_p7 }
  0x27   : > { %p2045_p10 = pneg %p2044_p9 }
  0x29   : > { %p2050_p12 = pnand %p2048_p11, %p2045_p10 }
  0x2b   : > { %2053 = shalt.err (!%p2050_p12)
}
  0x2c   : > { %s2054_s22 = scalar_lea.vmem %s249_s18, 16  ;;  %s2061_s10 = scalar_lea.vmem %s249_s18, 32 }
  0x2d   : > { %p2055_p13 = scmp.ne.s32.totalorder %s249_s18, %s2054_s22  ;;  %p2062_p5 = scmp.lt.s32.totalorder %s249_s18, %s249_s18 }
  0x2e   : > { %p2063_p2 = scmp.lt.s32.totalorder %s2061_s10, %s2054_s22 }
  0x2f   : > { %p2057_p0 = pnand %p2055_p13, %p2559_p8 }
  0x30   : > { %p2064_p1 = por %p2063_p2, %p2062_p5 }
  0x31   : > { %p2058_p3 = pneg %p2057_p0 }
  0x33   : > { %p2065_p4 = pnand %p2064_p1, %p2058_p3 }
  0x35   : > { %2068 = shalt.err (!%p2065_p4)
}
  0x36   : > { %1846 = dma.hbm_to_vmem [thread:$0]  (!%p2545_p6), %s3134_s3, 16, %s249_s18, [#allocation10]  }
  0x37   : > { %s3136_s5 = sld [smem:[#allocation36_spill]] }
  0x3d   : > { %s2069_s20 = scalar_lea.hbm %s3136_s5, 1024 }
  0x3e   : > { %p2070_p7 = scmp.ne.s32.totalorder %s3136_s5, %s2069_s20  ;;  %p2076_p1 = scmp.lt.u32.totalorder %s2069_s20, %s3136_s5 }
  0x40   : > { %p2072_p9 = pnand %p2070_p7, %p2559_p8 }
  0x42   : > { %p2073_p2 = pneg %p2072_p9 }
  0x44   : > { %p2078_p4 = pnand %p2076_p1, %p2073_p2 }
  0x46   : > { %2081 = shalt.err (!%p2078_p4)
}
  0x47   : > { %s2082_s18 = scalar_lea.vmem %s2549_s21, 1024  ;;  %p2090_p13 = scmp.lt.s32.totalorder %s2549_s21, %s2549_s21 }
  0x48   : > { %p2083_p10 = scmp.ne.s32.totalorder %s2549_s21, %s2082_s18  ;;  %p2091_p0 = scmp.lt.s32.totalorder %s2082_s18, %s2082_s18 }
  0x4a   : > { %p2085_p11 = pnand %p2083_p10, %p2559_p8  ;;  %p2092_p3 = por %p2091_p0, %p2090_p13 }
  0x4c   : > { %p2086_p12 = pneg %p2085_p11 }
  0x4e   : > { %p2093_p5 = pnand %p2092_p3, %p2086_p12 }
  0x50   : > { %2096 = shalt.err (!%p2093_p5)
}
  0x51   : > { %s3103_s2 = smov 64   ;;  %s3105_s24 = smov 4  }
  0x52   : > { %1852 = dma.hbm_to_vmem [thread:$0]  (!%p2545_p6), %s3136_s5, 1024, %s2549_s21, [#allocation13], %s3103_s2, %s3103_s2, %s3105_s24  }
  0x53   : > { %s37_s7 = sadd.s32 1, %s2397_s12  ;;  %s40_s16 = sadd.s32 1, %s2401_s13 }
  0x54   : > { %p38_p7 = scmp.ge.s32.totalorder %s37_s7, 2  ;;  %p3113_p9 = scmp.eq.s32.totalorder %s2405_s14, 0 }
  0x55   : > { %s75_s20 = sadd.s32 1, %s2373_s29  ;;  %p82_p2 = scmp.ne.s32.totalorder %s2373_s29, %s2369_s28 }
  0x56   : > { %s3206_s7 = smov (%p38_p7, %s37_s7), 0  ;;  %s3208_s16 = smov (!%p38_p7, %s40_s16), %s2401_s13 }
  0x57   : > { %3137 = sst [smem:[#allocation28_spill]] %s3206_s7  ;;  %s45_s22 = ssub.s32 %s2397_s12, %s3206_s7 }
  0x58   : > { %p42_p1 = scmp.ge.s32.totalorder %s3208_s16, 2  ;;  %p73_p4 = scmp.eq.s32.totalorder %s45_s22, 0 }
  0x59   : > { %p2614_p10 = por %p82_p2, %p3113_p9  ;;  %p88_p11 = scmp.ne.s32.totalorder %s2369_s28, %s2365_s27 }
  0x5a   : > { %s3210_s16 = smov (%p42_p1, %s3208_s16), 0  ;;  %p3141_p12 = scmp.eq.s32.totalorder %s2531_s15, 0 }
  0x5b   : > { %3139 = sst [smem:[#allocation29_spill]] %s3210_s16  ;;  %s2627_s18 = ssub.s32 %s2401_s13, %s3210_s16 }
  0x5c   : > { %s2623_s10 = scalar_select %p73_p4, %s2373_s29, %s75_s20  }
  0x5d   : > { %p2631_p13 = por %p88_p11, %p3141_p12  ;;  %s46_s23 = sor.u32 %s45_s22, %s2627_s18 }
  0x5e   : > { %3140 = sst [smem:[#allocation30_spill]] %s2623_s10  ;;  %p2637_p3 = scmp.eq.s32.totalorder %s46_s23, 0 }
  0x5f   : > { %s3142_s11 = scalar_select %p2631_p13, 1, 0 }
  0x60   : > { %s3144_s27 = scalar_select %p2637_p3, 1, 0 }
  0x61   : > { %3143 = sst [smem:[#allocation31_spill]] %s3142_s11  ;;  %p3112_p5 = scmp.lt.s32.totalorder %s2405_s14, 4 }
  0x62   : > { %s319_s2 = sand.u32 1, %s2405_s14   ;;  %s321_s24 = sand.u32 1, %s2373_s29  }
  0x63   : > { %s1495_s20 = sshll.u32 %s321_s24, 6  ;;  %s1577_s3 = sshll.u32 %s2397_s12, 10 }
  0x64   : > { %s3145_s1 = sld [smem:[#allocation33_spill]]  ;;  %s323_s10 = scalar_lea.vmem [#allocation6], %s1495_s20 }
  0x65   : > { %s330_s22 = sshll.u32 %s323_s10, 4  ;;  %p2656_p7 = pnand %p3112_p5, %p2614_p10  ;;  %s2650_s22 = int_to_ptr.vmem [resolvable:$true] %s330_s22 }
  0x66   : > { %s2411_s24 = smov [#allocation11]  }
  0x67   : > { %s2660_s5 = sshll.u32 %s2411_s24, 4  ;;  %p2099_p1 = pneg %p2656_p7  ;;  %s259_s5 = int_to_ptr.vmem [resolvable:$true] %s2660_s5 }
  0x6a   : > { %s2648_s7 = scalar_lea.hbm %s3145_s1, %s1577_s3  ;;  %s2662_s3 = scalar_lea.sflag [#allocation7], %s319_s2 }
  0x6b   : > { %s2097_s16 = scalar_lea.hbm %s2648_s7, 1024  ;;  %s2102_s20 = scalar_lea.hbm %s3145_s1, 2048 }
  0x6c   : > { %p2098_p2 = scmp.ne.s32.totalorder %s2648_s7, %s2097_s16  ;;  %p2103_p10 = scmp.lt.u32.totalorder %s2648_s7, %s3145_s1 }
  0x6d   : > { %p2104_p12 = scmp.lt.u32.totalorder %s2102_s20, %s2097_s16  ;;  %p2106_p5 = scmp.lt.u32.totalorder %s2097_s16, %s2648_s7 }
  0x6e   : > { %p2100_p4 = pnand %p2099_p1, %p2098_p2 }
  0x6f   : > { %p2105_p0 = por %p2104_p12, %p2103_p10 }
  0x70   : > { %p2101_p11 = pneg %p2100_p4 }
  0x71   : > { %p2107_p9 = por %p2106_p5, %p2105_p0 }
  0x73   : > { %p2108_p13 = pnand %p2107_p9, %p2101_p11 }
  0x75   : > { %2111 = shalt.err (!%p2108_p13)
}
  0x76   : > { %s2112_s2 = scalar_lea.vmem %s2650_s22, 1024  ;;  %s2412_s24 = smov [#allocation6]  }
  0x77   : > { %p2113_p2 = scmp.ne.s32.totalorder %s2650_s22, %s2112_s2  ;;  %s2117_s21 = sshll.u32 %s2412_s24, 4  ;;  %s2118_s21 = int_to_ptr.vmem [resolvable:$false] %s2117_s21 }
  0x78   : > { %s2119_s29 = scalar_lea.vmem %s2118_s21, 2048  ;;  %p2120_p6 = scmp.lt.s32.totalorder %s2650_s22, %s2118_s21 }
  0x79   : > { %p2115_p4 = pnand %p2113_p2, %p2099_p1  ;;  %p2121_p10 = scmp.lt.s32.totalorder %s2119_s29, %s2112_s2 }
  0x7b   : > { %p2116_p3 = pneg %p2115_p4  ;;  %p2122_p12 = por %p2121_p10, %p2120_p6 }
  0x7d   : > { %p2123_p0 = pnand %p2122_p12, %p2116_p3 }
  0x7f   : > { %2126 = shalt.err (!%p2123_p0)
}
  0x80   : > { %s3147_s11 = smov 4   ;;  %s3148_s16 = smov 64  }
  0x81   : > { %1862 = dma.hbm_to_vmem [thread:$0]  (!%p2656_p7), %s2648_s7, 1024, %s2650_s22, %s2662_s3, %s3148_s16, %s3148_s16, %s3147_s11  }
  0x82   : > { %s2413_s10 = smov [#allocation14]   ;;  %s2127_s2 = scalar_lea.hbm %s3094_s4, 1024 }
  0x83   : > { %s285_s20 = sshll.u32 %s2413_s10, 4  ;;  %p2128_p6 = scmp.ne.s32.totalorder %s3094_s4, %s2127_s2  ;;  %s286_s20 = int_to_ptr.vmem [resolvable:$true] %s285_s20 }
  0x84   : > { %p2134_p3 = scmp.lt.u32.totalorder %s2127_s2, %s3094_s4 }
  0x85   : > { %p2130_p9 = pnand %p2128_p6, %p2559_p8 }
  0x87   : > { %p2131_p13 = pneg %p2130_p9 }
  0x89   : > { %p2136_p5 = pnand %p2134_p3, %p2131_p13 }
  0x8b   : > { %2139 = shalt.err (!%p2136_p5)
}
  0x8c   : > { %s2140_s7 = scalar_lea.vmem %s259_s5, 1024  ;;  %p2148_p2 = scmp.lt.s32.totalorder %s259_s5, %s259_s5 }
  0x8d   : > { %p2141_p7 = scmp.ne.s32.totalorder %s259_s5, %s2140_s7  ;;  %p2149_p4 = scmp.lt.s32.totalorder %s2140_s7, %s2140_s7 }
  0x8f   : > { %p2143_p1 = pnand %p2141_p7, %p2559_p8  ;;  %p2150_p10 = por %p2149_p4, %p2148_p2 }
  0x91   : > { %p2144_p11 = pneg %p2143_p1 }
  0x93   : > { %p2151_p12 = pnand %p2150_p10, %p2144_p11 }
  0x95   : > { %2154 = shalt.err (!%p2151_p12)
}
  0x96   : > { %p3149_p0 = scmp.ne.s32.totalorder %s3133_s19, 0  ;;  %s2155_s24 = scalar_lea.hbm %s3096_s6, 16 }
  0x97   : > { %p2156_p6 = scmp.ne.s32.totalorder %s3096_s6, %s2155_s24  ;;  %p2162_p3 = scmp.lt.u32.totalorder %s2155_s24, %s3096_s6 }
  0x98   : > { %1849 = dma.hbm_to_vmem [thread:$0]  (!%p3149_p0), %s3094_s4, 1024, %s259_s5, [#allocation10], %s3148_s16, %s3148_s16, %s3147_s11  }
  0x99   : > { %p2158_p9 = pnand %p2156_p6, %p2559_p8 }
  0x9b   : > { %p2159_p13 = pneg %p2158_p9 }
  0x9d   : > { %p2164_p5 = pnand %p2162_p3, %p2159_p13 }
  0x9f   : > { %2167 = shalt.err (!%p2164_p5)
}
  0xa0   : > { %s2168_s7 = scalar_lea.vmem %s286_s20, 16  ;;  %s2175_s5 = scalar_lea.vmem %s286_s20, 32 }
  0xa1   : > { %p2169_p7 = scmp.ne.s32.totalorder %s286_s20, %s2168_s7  ;;  %p2176_p2 = scmp.lt.s32.totalorder %s286_s20, %s286_s20 }
  0xa2   : > { %p2177_p4 = scmp.lt.s32.totalorder %s2175_s5, %s2168_s7 }
  0xa3   : > { %p2171_p1 = pnand %p2169_p7, %p2559_p8 }
  0xa4   : > { %p2178_p10 = por %p2177_p4, %p2176_p2 }
  0xa5   : > { %p2172_p11 = pneg %p2171_p1 }
  0xa7   : > { %p2179_p12 = pnand %p2178_p10, %p2172_p11 }
  0xa9   : > { %2182 = shalt.err (!%p2179_p12)
}
  0xaa   : > { %1855 = dma.hbm_to_vmem [thread:$0]  (!%p3149_p0), %s3096_s6, 16, %s286_s20, [#allocation13]  }
  0xab   : > { %s49_s17 = sadd.s32 1, %s2385_s9  ;;  %p3150_p8 = scmp.ne.s32.totalorder %s3144_s27, 0 }
  0xac   : > { %p56_p6 = scmp.ne.s32.totalorder %s2385_s9, %s2381_s8  ;;  %p62_p9 = scmp.ne.s32.totalorder %s2381_s8, %s2377_s30 }
  0xad   : > { %s2737_s19 = scalar_select %p3150_p8, %s2385_s9, %s49_s17  }
  0xae   : > { %s296_s22 = sand.u32 1, %s2385_s9   ;;  %s1576_s10 = sshll.u32 %s2401_s13, 5 }
  0xaf   : > { %p3151_p13 = scmp.eq.s32.totalorder %s2405_s14, 0  ;;  %p3152_p5 = scmp.eq.s32.totalorder %s2531_s15, 0 }
  0xb0   : > { %s1491_s21 = sshll.u32 %s296_s22, 6  ;;  %s306_s2 = sadd.s32 %s2397_s12, %s1576_s10 }
  0xb1   : > { %p58_p3 = por %p3151_p13, %p56_p6  ;;  %p2749_p7 = por %p3152_p5, %p62_p9 }
  0xb2   : > { %s1494_s29 = sshll.u32 %s306_s2, 6  ;;  %s300_s20 = scalar_lea.vmem [#allocation3], %s1491_s21 }
  0xb3   : > { %s309_s23 = sshll.u32 %s300_s20, 4  ;;  %s3154_s0 = sld [smem:[#allocation32_spill]]  ;;  %s2759_s23 = int_to_ptr.vmem [resolvable:$true] %s309_s23 }
  0xb4   : > { %p3155_p0 = scmp.lt.s32.totalorder %s2405_s14, 4  ;;  %s2767_s1 = scalar_lea.sflag [#allocation4], %s296_s22 }
  0xb6   : > { %p2763_p1 = pnand %p3155_p0, %p58_p3 }
  0xb8   : > { %p2185_p2 = pneg %p2763_p1 }
  0xb9   : > { %s2757_s5 = scalar_lea.hbm %s3154_s0, %s1494_s29  ;;  %s2188_s21 = scalar_lea.hbm %s3154_s0, 4096 }
  0xba   : > { %s2183_s28 = scalar_lea.hbm %s2757_s5, 1024  ;;  %p2189_p12 = scmp.lt.u32.totalorder %s2757_s5, %s3154_s0 }
  0xbb   : > { %p2184_p11 = scmp.ne.s32.totalorder %s2757_s5, %s2183_s28  ;;  %p2190_p8 = scmp.lt.u32.totalorder %s2188_s21, %s2183_s28 }
  0xbc   : > { %p2192_p9 = scmp.lt.u32.totalorder %s2183_s28, %s2757_s5 }
  0xbd   : > { %p2186_p4 = pnand %p2185_p2, %p2184_p11  ;;  %p2191_p6 = por %p2190_p8, %p2189_p12 }
  0xbf   : > { %p2187_p10 = pneg %p2186_p4  ;;  %p2193_p13 = por %p2192_p9, %p2191_p6 }
  0xc1   : > { %p2194_p3 = pnand %p2193_p13, %p2187_p10 }
  0xc3   : > { %2197 = shalt.err (!%p2194_p3)
}
  0xc4   : > { %s2198_s22 = scalar_lea.vmem %s2759_s23, 1024  ;;  %s2414_s20 = smov [#allocation3]  }
  0xc5   : > { %p2199_p5 = scmp.ne.s32.totalorder %s2759_s23, %s2198_s22  ;;  %s2203_s7 = sshll.u32 %s2414_s20, 4  ;;  %s2204_s7 = int_to_ptr.vmem [resolvable:$false] %s2203_s7 }
  0xc6   : > { %s2205_s27 = scalar_lea.vmem %s2204_s7, 2048  ;;  %p2206_p4 = scmp.lt.s32.totalorder %s2759_s23, %s2204_s7 }
  0xc7   : > { %p2201_p0 = pnand %p2199_p5, %p2185_p2  ;;  %p2207_p12 = scmp.lt.s32.totalorder %s2205_s27, %s2198_s22 }
  0xc9   : > { %p2202_p11 = pneg %p2201_p0  ;;  %p2208_p8 = por %p2207_p12, %p2206_p4 }
  0xcb   : > { %p2209_p6 = pnand %p2208_p8, %p2202_p11 }
  0xcd   : > { %2212 = shalt.err (!%p2209_p6)
}
  0xce   : > { %s2415_s28 = smov 128   ;;  %s3157_s17 = sld [smem:[#allocation22_spill]] }
  0xcf   : > { %1859 = dma.hbm_to_vmem [thread:$0]  (!%p2763_p1), %s2757_s5, 1024, %s2759_s23, %s2767_s1, %s2415_s28, %s3148_s16, %s3147_s11  }
  0xd0   : > { %s1484_s30 = sadd.s32 4294967294, %s2405_s14   ;;  %s101_s10 = sadd.s32 1, %s2361_s26 }
  0xd1   : > { %p108_p2 = scmp.ne.s32.totalorder %s2361_s26, %s2357_s25  ;;  %p3158_p10 = scmp.eq.s32.totalorder %s2627_s18, 0 }
  0xd2   : > { %p3159_p9 = scmp.eq.s32.totalorder %s2405_s14, 0  ;;  %p3161_p5 = scmp.eq.s32.totalorder %s2531_s15, 3 }
  0xd3   : > { %s2804_s21 = scalar_select %p3158_p10, %s2361_s26, %s101_s10  }
  0xd4   : > { %p2808_p13 = por %p108_p2, %p3159_p9  ;;  %p114_p3 = scmp.ne.s32.totalorder %s2357_s25, %s3157_s17 }
  0xd5   : > { %p2816_p0 = por %p3161_p5, %p108_p2  ;;  %p228_p1 = scmp.eq.s32.totalorder %s1484_s30, 3 }
  0xd6   : > { %p3163_p11 = scmp.eq.s32.totalorder %s2531_s15, 0  ;;  %s342_s18 = sand.u32 1, %s2361_s26  }
  0xd7   : > { %s3162_s29 = scalar_select %p2816_p0, 1, 0 }
  0xd8   : > { %p2822_p4 = por %p114_p3, %p3163_p11  ;;  %p2827_p12 = por %p228_p1, %p114_p3 }
  0xd9   : > { %s1498_s1 = sshll.u32 %s342_s18, 6  ;;  %s1578_s22 = sshll.u32 %s2401_s13, 10 }
  0xda   : > { %s3164_s23 = scalar_select %p2822_p4, 1, 0 }
  0xdb   : > { %s3165_s5 = scalar_select %p2827_p12, 1, 0 }
  0xdc   : > { %s3166_s27 = sld [smem:[#allocation34_spill]]  ;;  %s344_s30 = scalar_lea.vmem [#allocation8], %s1498_s1 }
  0xdd   : > { %s351_s10 = sshll.u32 %s344_s30, 4  ;;  %p3168_p8 = scmp.lt.s32.totalorder %s2405_s14, 4  ;;  %s2837_s10 = int_to_ptr.vmem [resolvable:$true] %s351_s10 }
  0xdf   : > { %p2843_p6 = pnand %p3168_p8, %p2808_p13 }
  0xe1   : > { %p2215_p10 = pneg %p2843_p6 }
  0xe2   : > { %s3167_s17 = smov %s3166_s27  ;;  %s2835_s28 = scalar_lea.hbm %s3166_s27, %s1578_s22 }
  0xe3   : > { %s2213_s18 = scalar_lea.hbm %s2835_s28, 1024  ;;  %s2218_s20 = scalar_lea.hbm %s3167_s17, 2048 }
  0xe4   : > { %p2214_p2 = scmp.ne.s32.totalorder %s2835_s28, %s2213_s18  ;;  %p2219_p13 = scmp.lt.u32.totalorder %s2835_s28, %s3167_s17 }
  0xe5   : > { %p2220_p5 = scmp.lt.u32.totalorder %s2218_s20, %s2213_s18  ;;  %p2222_p11 = scmp.lt.u32.totalorder %s2213_s18, %s2835_s28 }
  0xe6   : > { %p2216_p9 = pnand %p2215_p10, %p2214_p2 }
  0xe7   : > { %p2221_p1 = por %p2220_p5, %p2219_p13 }
  0xe8   : > { %p2217_p3 = pneg %p2216_p9 }
  0xe9   : > { %p2223_p8 = por %p2222_p11, %p2221_p1 }
  0xeb   : > { %p2224_p12 = pnand %p2223_p8, %p2217_p3 }
  0xed   : > { %2227 = shalt.err (!%p2224_p12)
}
  0xee   : > { %s2228_s27 = scalar_lea.vmem %s2837_s10, 1024  ;;  %s2416_s30 = smov [#allocation8]  }
  0xef   : > { %p2229_p2 = scmp.ne.s32.totalorder %s2837_s10, %s2228_s27  ;;  %s2233_s1 = sshll.u32 %s2416_s30, 4  ;;  %s2234_s1 = int_to_ptr.vmem [resolvable:$false] %s2233_s1 }
  0xf0   : > { %s2235_s22 = scalar_lea.vmem %s2234_s1, 2048  ;;  %p2236_p4 = scmp.lt.s32.totalorder %s2837_s10, %s2234_s1 }
  0xf1   : > { %p2231_p9 = pnand %p2229_p2, %p2215_p10  ;;  %p2237_p13 = scmp.lt.s32.totalorder %s2235_s22, %s2228_s27 }
  0xf3   : > { %p2232_p0 = pneg %p2231_p9  ;;  %p2238_p5 = por %p2237_p13, %p2236_p4 }
  0xf5   : > { %p2239_p1 = pnand %p2238_p5, %p2232_p0 }
  0xf7   : > { %2242 = shalt.err (!%p2239_p1)
}
  0xf8   : > { %1865 = dma.hbm_to_vmem [thread:$0]  (!%p2843_p6), %s2835_s28, 1024, %s2837_s10, %s2662_s3, %s3148_s16, %s3148_s16, %s3147_s11  }
  0xf9   : > { %s3170_s18 = sld [smem:[#allocation27_spill]] }
  0xff   : > { %p3171_p12 = scmp.ne.s32.totalorder %s3170_s18, 0 }
 0x100   : > { %s365_s20 = sand.u32 (!%p3171_p12), 1, %s2381_s8  }
 0x101   : > { %363 = sbr.rel (%p3171_p12) target bundleno = 877 (0x36d), region = 48  ;;  %s1502_s2 = sshll.u32 (!%p3171_p12), %s365_s20, 6 }
 0x102   : > { %s366_s7 = scalar_lea.sflag (!%p3171_p12), [#allocation4], %s365_s20  ;;  %s2879_s27 = scalar_lea.vmem (!%p3171_p12), [#allocation3], %s1502_s2 }
 0x108   : > { %2328 = dma.done.wait (%p2749_p7), %s366_s7, 1024  }
 0x109   : > { %2330 = vsyncadd (%p2749_p7), %s366_s7, 4294966272  ;;  %s3172_s0 = sld [smem:[#allocation23_spill]]  ;;  %s3173_s30 = sld [smem:[#allocation31_spill]] }
 0x10a   : > { %s374_s1 = sand.u32 1, %s2531_s15  }
 0x10b   : > { %s375_s16 = scalar_lea.sflag [#allocation7], %s374_s1 }
 0x10f   : > { %s376_s3 = sand.u32 1, %s3172_s0   ;;  %p3174_p0 = scmp.ne.s32.totalorder %s3173_s30, 0 }
 0x110   : > { %s1503_s11 = sshll.u32 %s376_s3, 6 }
 0x111   : > { %s2887_s28 = scalar_lea.vmem [#allocation6], %s1503_s11 }
 0x112   : > { %2332 = dma.done.wait (%p3174_p0), %s375_s16, 1024  }
 0x113   : > { %2334 = vsyncadd (%p3174_p0), %s375_s16, 4294966272  ;;  %s385_s10 = sand.u32 1, %s2357_s25   ;;  %p3175_p7 = scmp.ne.s32.totalorder %s3164_s23, 0 }
 0x114   : > { %s2896_s24 = sshll.u32 %s385_s10, 6 }
 0x115   : > { %s2899_s22 = scalar_lea.vmem [#allocation8], %s2896_s24 }
 0x116   : > { %2336 = dma.done.wait (%p3175_p7), %s375_s16, 1024  }
 0x117   : > { %2338 = vsyncadd (%p3175_p7), %s375_s16, 4294966272  ;;  %p3176_p4 = scmp.eq.s32.totalorder %s2531_s15, 0 }
 0x119   : > { %2340 = dma.done.wait (%p3176_p4), [#allocation10], 1040   ;;  %p3177_p6 = pmov %p3176_p4 }
 0x11a   : > { %p3178_p10 = pmov %p3176_p4 }
 0x11b   : > { %2342 = vsyncadd (%p3177_p6), [#allocation10], 4294966256 }
 0x11c   : > { %2344 = dma.done.wait (%p3178_p10), [#allocation13], 1040   ;;  %p3179_p3 = pmov %p3176_p4 }
 0x11d   : > { %v2001_v0 = vld [vmem:[%s2887_s28] sm:$0xff]   ;;  %v2002_v1 = vld [vmem:[%s2887_s28 + $0x8] sm:$0xff]   ;;  %v2003_v2 = vld [vmem:[%s2887_s28 + $0x10] sm:$0xff]   ;;  %s2938_s15 = scalar_lea.vmem [#allocation15], %s2896_s24  ;;  %s3180_s23 = sld [smem:[#allocation25_spill]] }
 0x11e   : > { %2346 = vsyncadd (%p3179_p3), [#allocation13], 4294966256  ;;  %1691 = vmatprep.subr.bf16.mxu0 %v2001_v0  ;;  %1787 = vmatprep.subr.bf16.mxu1 %v2001_v0  ;;  %v2004_v3 = vld [vmem:[%s2887_s28 + $0x18] sm:$0xff]   ;;  %v2009_v4 = vld [vmem:[%s2879_s27] sm:$0xff]  }
 0x11f   : > { %1692 = vmatpush3.bf16.msra.mxu0 %v2001_v0  ;;  %1795 = vmatpush3.bf16.msra.mxu1 %v2001_v0  ;;  %v2010_v5 = vld [vmem:[%s2879_s27 + $0x20] sm:$0xff]   ;;  %v2006_v7 = vld [vmem:[%s2887_s28 + $0x28] sm:$0xff]   ;;  %v2007_v8 = vld [vmem:[%s2887_s28 + $0x30] sm:$0xff]  }
 0x120   : > { %1693 = vmatprep.subr.bf16.mxu0 %v2002_v1  ;;  %1788 = vmatprep.subr.bf16.mxu1 %v2002_v1  ;;  %v2005_v6 = vld [vmem:[%s2887_s28 + $0x20] sm:$0xff]   ;;  %v2008_v9 = vld [vmem:[%s2887_s28 + $0x38] sm:$0xff]   ;;  %v2011_v10 = vld [vmem:[%s2879_s27 + $0x8] sm:$0xff]  }
 0x121   : > { %1707 = vmatprep.mubr.bf16.mxu0 %v2009_v4  ;;  %1715 = vmatprep.mubr.bf16.mxu1 %v2010_v5  ;;  %v2012_v11 = vld [vmem:[%s2879_s27 + $0x28] sm:$0xff]   ;;  %v2013_v12 = vld [vmem:[%s2879_s27 + $0x10] sm:$0xff]   ;;  %v2015_v14 = vld [vmem:[%s2879_s27 + $0x18] sm:$0xff]  }
 0x122   : > { %v2014_v13 = vld [vmem:[%s2879_s27 + $0x30] sm:$0xff]   ;;  %v2016_v15 = vld [vmem:[%s2879_s27 + $0x38] sm:$0xff]  }
 0x123   : > { %1694 = vmatpush3.bf16.msra.mxu0 %v2002_v1  ;;  %1796 = vmatpush3.bf16.msra.mxu1 %v2002_v1  ;;  %p1526_p11 = scmp.ne.s32.totalorder %s3180_s23, 0 }
 0x124   : > { %1695 = vmatprep.subr.bf16.mxu0 %v2003_v2  ;;  %1789 = vmatprep.subr.bf16.mxu1 %v2003_v2 }
 0x127   : > { %1696 = vmatpush3.bf16.msra.mxu0 %v2003_v2  ;;  %1797 = vmatpush3.bf16.msra.mxu1 %v2003_v2 }
 0x128   : > { %1697 = vmatprep.subr.bf16.mxu0 %v2004_v3  ;;  %1790 = vmatprep.subr.bf16.mxu1 %v2004_v3 }
 0x12b   : > { %1698 = vmatpush3.bf16.msra.mxu0 %v2004_v3  ;;  %1798 = vmatpush3.bf16.msra.mxu1 %v2004_v3 }
 0x12c   : > { %1699 = vmatprep.subr.bf16.mxu0 %v2005_v6  ;;  %1791 = vmatprep.subr.bf16.mxu1 %v2005_v6 }
 0x12f   : > { %1700 = vmatpush3.bf16.msra.mxu0 %v2005_v6  ;;  %1799 = vmatpush3.bf16.msra.mxu1 %v2005_v6 }
 0x130   : > { %1701 = vmatprep.subr.bf16.mxu0 %v2006_v7  ;;  %1792 = vmatprep.subr.bf16.mxu1 %v2006_v7 }
 0x133   : > { %1702 = vmatpush3.bf16.msra.mxu0 %v2006_v7  ;;  %1800 = vmatpush3.bf16.msra.mxu1 %v2006_v7 }
 0x134   : > { %1703 = vmatprep.subr.bf16.mxu0 %v2007_v8  ;;  %1793 = vmatprep.subr.bf16.mxu1 %v2007_v8 }
 0x137   : > { %1704 = vmatpush3.bf16.msra.mxu0 %v2007_v8  ;;  %1801 = vmatpush3.bf16.msra.mxu1 %v2007_v8 }
 0x138   : > { %1705 = vmatprep.subr.bf16.mxu0 %v2008_v9  ;;  %1794 = vmatprep.subr.bf16.mxu1 %v2008_v9 }
 0x13b   : > { %1706 = vmatpush3.bf16.msra.mxu0 %v2008_v9  ;;  %1802 = vmatpush3.bf16.msra.mxu1 %v2008_v9 }
 0x13e   : > { %1708 = vmatmul.mubr.bf16.vlgmr.msra.gmra.mrb[0].mxu0 %v2011_v10  ;;  %1716 = vmatmul.mubr.bf16.vlgmr.msra.gmra.mrb[0].mxu1 %v2012_v11 }
 0x13f   : > { %1711 = vmatprep.mubr.bf16.mxu0 %v2013_v12  ;;  %1719 = vmatprep.mubr.bf16.mxu1 %v2014_v13 }
 0x146   : > { %1712 = vmatmul.mubr.bf16.gmra.mrb[4].mxu0 %v2015_v14  ;;  %1720 = vmatmul.mubr.bf16.gmra.mrb[4].mxu1 %v2016_v15 }
 0x211   : > { %v1709_v16 = vpop.f32.mrb[0].mxu0  ;;  %v2929_v17 = vpop.f32.mrb[0].mxu1 }
 0x212   : > { %v611_v18 = vpop.f32.mrb[1].mxu0  ;;  %v643_v19 = vpop.f32.mrb[1].mxu1  ;;  %680 = vst [vmem:[#allocation2 + $0x10] sm:$0xff] (!%p1526_p11), %v1709_v16  ;;  %688 = vst [vmem:[#allocation2 + $0x50] sm:$0xff] (!%p1526_p11), %v2929_v17 }
 0x213   : > { %v1710_v20 = vpop.f32.mrb[2].mxu0  ;;  %v1718_v21 = vpop.f32.mrb[2].mxu1  ;;  %678 = vst [vmem:[#allocation2] sm:$0xff] (!%p1526_p11), %v611_v18  ;;  %686 = vst [vmem:[#allocation2 + $0x40] sm:$0xff] (!%p1526_p11), %v643_v19 }
 0x214   : > { %v614_v22 = vpop.f32.mrb[3].mxu0  ;;  %v646_v23 = vpop.f32.mrb[3].mxu1  ;;  %681 = vst [vmem:[#allocation2 + $0x18] sm:$0xff] (!%p1526_p11), %v1710_v20  ;;  %689 = vst [vmem:[#allocation2 + $0x58] sm:$0xff] (!%p1526_p11), %v1718_v21 }
 0x215   : > { %679 = vst [vmem:[#allocation2 + $0x8] sm:$0xff] (!%p1526_p11), %v614_v22  ;;  %687 = vst [vmem:[#allocation2 + $0x48] sm:$0xff] (!%p1526_p11), %v646_v23 }
 0x216   : > { %677 = sbr.rel (%p1526_p11) target bundleno = 542 (0x21e), region = 80 }
 0x219   : > { %v1713_v24 = vpop.f32.mrb[4].mxu0  ;;  %v2931_v25 = vpop.f32.mrb[4].mxu1 }
 0x21a   : > { %v627_v26 = vpop.f32.mrb[5].mxu0  ;;  %v2933_v27 = vpop.f32.mrb[5].mxu1  ;;  %684 = vst [vmem:[#allocation2 + $0x30] sm:$0xff] (!%p1526_p11), %v1713_v24  ;;  %692 = vst [vmem:[#allocation2 + $0x70] sm:$0xff] (!%p1526_p11), %v2931_v25 }
 0x21b   : > { %v1714_v28 = vpop.f32.mrb[6].mxu0  ;;  %v2935_v29 = vpop.f32.mrb[6].mxu1  ;;  %682 = vst [vmem:[#allocation2 + $0x20] sm:$0xff] (!%p1526_p11), %v627_v26  ;;  %690 = vst [vmem:[#allocation2 + $0x60] sm:$0xff] (!%p1526_p11), %v2933_v27 }
 0x21c   : > { %v630_v30 = vpop.f32.mrb[7].mxu0  ;;  %v662_v31 = vpop.f32.mrb[7].mxu1  ;;  %685 = vst [vmem:[#allocation2 + $0x38] sm:$0xff] (!%p1526_p11), %v1714_v28  ;;  %693 = vst [vmem:[#allocation2 + $0x78] sm:$0xff] (!%p1526_p11), %v2935_v29 }
 0x21d   : > { %683 = vst [vmem:[#allocation2 + $0x28] sm:$0xff] %v630_v30  ;;  %691 = vst [vmem:[#allocation2 + $0x68] sm:$0xff] %v662_v31 }
 0x21e PF: > { %s3181_s18 = sld [smem:[#allocation25_spill]] }
 0x224   : > { %p1527_p8 = scmp.le.s32.totalorder %s3181_s18, 0 }
 0x225   : > { %v698_v32 = vld [vmem:[#allocation2] sm:$0xff] (!%p1527_p8)  ;;  %v699_v33 = vld [vmem:[#allocation2 + $0x8] sm:$0xff] (!%p1527_p8)  ;;  %v700_v34 = vld [vmem:[#allocation2 + $0x10] sm:$0xff] (!%p1527_p8) }
 0x226   : > { %697 = sbr.rel (%p1527_p8) target bundleno = 560 (0x230), region = 84  ;;  %v714_v35 = vadd.f32 (!%p1527_p8), %v698_v32, %v611_v18  ;;  %v715_v36 = vadd.f32 (!%p1527_p8), %v699_v33, %v614_v22  ;;  %v716_v37 = vadd.f32 (!%p1527_p8), %v1709_v16, %v700_v34  ;;  %v701_v38 = vld [vmem:[#allocation2 + $0x18] sm:$0xff] (!%p1527_p8)  ;;  %v702_v39 = vld [vmem:[#allocation2 + $0x20] sm:$0xff] (!%p1527_p8)  ;;  %v703_v40 = vld [vmem:[#allocation2 + $0x28] sm:$0xff] (!%p1527_p8) }
 0x227   : > { %v717_v41 = vadd.f32 (!%p1527_p8), %v1710_v20, %v701_v38  ;;  %v718_v42 = vadd.f32 (!%p1527_p8), %v702_v39, %v627_v26  ;;  %v719_v43 = vadd.f32 (!%p1527_p8), %v703_v40, %v630_v30  ;;  %v704_v44 = vld [vmem:[#allocation2 + $0x30] sm:$0xff] (!%p1527_p8)  ;;  %v705_v45 = vld [vmem:[#allocation2 + $0x38] sm:$0xff] (!%p1527_p8)  ;;  %v706_v46 = vld [vmem:[#allocation2 + $0x40] sm:$0xff] (!%p1527_p8) }
 0x228   : > { %730 = vst [vmem:[#allocation2] sm:$0xff] (!%p1527_p8), %v714_v35  ;;  %731 = vst [vmem:[#allocation2 + $0x8] sm:$0xff] (!%p1527_p8), %v715_v36  ;;  %v720_v47 = vadd.f32 (!%p1527_p8), %v1713_v24, %v704_v44  ;;  %v721_v48 = vadd.f32 (!%p1527_p8), %v1714_v28, %v705_v45  ;;  %v722_v49 = vadd.f32 (!%p1527_p8), %v706_v46, %v643_v19  ;;  %v707_v50 = vld [vmem:[#allocation2 + $0x48] sm:$0xff] (!%p1527_p8)  ;;  %v708_v51 = vld [vmem:[#allocation2 + $0x50] sm:$0xff] (!%p1527_p8) }
 0x229   : > { %732 = vst [vmem:[#allocation2 + $0x10] sm:$0xff] (!%p1527_p8), %v716_v37  ;;  %v709_v52 = vld [vmem:[#allocation2 + $0x58] sm:$0xff] (!%p1527_p8)  ;;  %733 = vst [vmem:[#allocation2 + $0x18] sm:$0xff] (!%p1527_p8), %v717_v41  ;;  %v723_v53 = vadd.f32 (!%p1527_p8), %v707_v50, %v646_v23  ;;  %v724_v54 = vadd.f32 (!%p1527_p8), %v2929_v17, %v708_v51  ;;  %v710_v56 = vld [vmem:[#allocation2 + $0x60] sm:$0xff] (!%p1527_p8) }
 0x22a   : > { %734 = vst [vmem:[#allocation2 + $0x20] sm:$0xff] (!%p1527_p8), %v718_v42  ;;  %735 = vst [vmem:[#allocation2 + $0x28] sm:$0xff] (!%p1527_p8), %v719_v43  ;;  %v725_v55 = vadd.f32 (!%p1527_p8), %v1718_v21, %v709_v52  ;;  %v711_v57 = vld [vmem:[#allocation2 + $0x68] sm:$0xff] (!%p1527_p8)  ;;  %v712_v58 = vld [vmem:[#allocation2 + $0x70] sm:$0xff] (!%p1527_p8)  ;;  %v726_v59 = vadd.f32 (!%p1527_p8), %v710_v56, %v2933_v27 }
 0x22b   : > { %736 = vst [vmem:[#allocation2 + $0x30] sm:$0xff] (!%p1527_p8), %v720_v47  ;;  %737 = vst [vmem:[#allocation2 + $0x38] sm:$0xff] (!%p1527_p8), %v721_v48  ;;  %v727_v60 = vadd.f32 (!%p1527_p8), %v711_v57, %v662_v31  ;;  %v728_v61 = vadd.f32 (!%p1527_p8), %v2931_v25, %v712_v58  ;;  %v713_v62 = vld [vmem:[#allocation2 + $0x78] sm:$0xff] (!%p1527_p8) }
 0x22c   : > { %738 = vst [vmem:[#allocation2 + $0x40] sm:$0xff] (!%p1527_p8), %v722_v49  ;;  %739 = vst [vmem:[#allocation2 + $0x48] sm:$0xff] (!%p1527_p8), %v723_v53  ;;  %v729_v63 = vadd.f32 (!%p1527_p8), %v2935_v29, %v713_v62 }
 0x22d   : > { %740 = vst [vmem:[#allocation2 + $0x50] sm:$0xff] %v724_v54  ;;  %741 = vst [vmem:[#allocation2 + $0x58] sm:$0xff] %v725_v55 }
 0x22e   : > { %742 = vst [vmem:[#allocation2 + $0x60] sm:$0xff] %v726_v59  ;;  %743 = vst [vmem:[#allocation2 + $0x68] sm:$0xff] %v727_v60 }
 0x22f   : > { %744 = vst [vmem:[#allocation2 + $0x70] sm:$0xff] %v728_v61  ;;  %745 = vst [vmem:[#allocation2 + $0x78] sm:$0xff] %v729_v63 }
 0x230 PF: > { %s3182_s20 = sld [smem:[#allocation25_spill]] }
 0x236   : > { %p1528_p2 = scmp.ne.s32.totalorder %s3182_s20, 1 }
 0x237   : > { %v2017_v0 = vld [vmem:[#allocation12] sm:$0xff] (!%p1528_p2)   ;;  %v2019_v2 = vld [vmem:[#allocation12 + $0x8] sm:$0xff] (!%p1528_p2)   ;;  %v2021_v4 = vld [vmem:[#allocation12 + $0x10] sm:$0xff] (!%p1528_p2)  }
 0x238   : > { %749 = sbr.rel (%p1528_p2) target bundleno = 849 (0x351), region = 88  ;;  %v2018_v1 = vld [vmem:[#allocation11] sm:$0xff] (!%p1528_p2)   ;;  %1723 = vmatprep.subr.bf16.mxu1 (!%p1528_p2), %v2017_v0  ;;  %v2020_v3 = vld [vmem:[#allocation11 + $0x8] sm:$0xff] (!%p1528_p2)   ;;  %v2022_v5 = vld [vmem:[#allocation11 + $0x10] sm:$0xff] (!%p1528_p2)  }
 0x239   : > { %1755 = vmatprep.subr.bf16.mxu0 (!%p1528_p2), %v2018_v1  ;;  %1724 = vmatpush3.bf16.msra.mxu1 (!%p1528_p2), %v2017_v0  ;;  %v2023_v6 = vld [vmem:[#allocation12 + $0x18] sm:$0xff] (!%p1528_p2)   ;;  %v2025_v8 = vld [vmem:[#allocation12 + $0x20] sm:$0xff] (!%p1528_p2)   ;;  %v2027_v10 = vld [vmem:[#allocation12 + $0x28] sm:$0xff] (!%p1528_p2)  }
 0x23a   : > { %1756 = vmatpush3.bf16.msra.mxu0 (!%p1528_p2), %v2018_v1  ;;  %1725 = vmatprep.subr.bf16.mxu1 (!%p1528_p2), %v2019_v2  ;;  %v2024_v7 = vld [vmem:[#allocation11 + $0x18] sm:$0xff] (!%p1528_p2)   ;;  %v2026_v9 = vld [vmem:[#allocation11 + $0x20] sm:$0xff] (!%p1528_p2)   ;;  %v2028_v11 = vld [vmem:[#allocation11 + $0x28] sm:$0xff] (!%p1528_p2)  }
 0x23b   : > { %1757 = vmatprep.subr.bf16.mxu0 (!%p1528_p2), %v2020_v3  ;;  %v2033_v12 = vld [vmem:[%s2899_s22] sm:$0xff] (!%p1528_p2)   ;;  %v751_v14 = vld [vmem:[#allocation2 + $0x8] sm:$0xff] (!%p1528_p2)  ;;  %v2029_v18 = vld [vmem:[#allocation12 + $0x30] sm:$0xff] (!%p1528_p2)  }
 0x23c   : > { %v750_v13 = vld [vmem:[#allocation2] sm:$0xff] (!%p1528_p2)  ;;  %1739 = vmatprep.mubr.bf16.mxu1 (!%p1528_p2), %v2033_v12  ;;  %v2030_v20 = vld [vmem:[#allocation11 + $0x30] sm:$0xff] (!%p1528_p2)   ;;  %v755_v26 = vld [vmem:[#allocation2 + $0x28] sm:$0xff] (!%p1528_p2) }
 0x23d   : > { %1726 = vmatpush3.bf16.msra.mxu1 (!%p1528_p2), %v2019_v2  ;;  %v2952_v15 = vld [vmem:[#allocation9] ss:$0 sm:$0xff] (!%p1528_p2)  ;;  %v752_v23 = vld [vmem:[#allocation2 + $0x10] sm:$0xff] (!%p1528_p2)  ;;  %v753_v24 = vld [vmem:[#allocation2 + $0x18] sm:$0xff] (!%p1528_p2) }
 0x23e   : > { %1758 = vmatpush3.bf16.msra.mxu0 (!%p1528_p2), %v2020_v3  ;;  %1727 = vmatprep.subr.bf16.mxu1 (!%p1528_p2), %v2021_v4  ;;  %v773_v16 = vadd.f32 (!%p1528_p2), %v2952_v15, %v750_v13  ;;  %v774_v17 = vadd.f32 (!%p1528_p2), %v2952_v15, %v751_v14  ;;  %v2031_v21 = vld [vmem:[#allocation12 + $0x38] sm:$0xff] (!%p1528_p2)   ;;  %v775_v27 = vadd.f32 (!%p1528_p2), %v2952_v15, %v752_v23  ;;  %v2034_v31 = vld [vmem:[%s2899_s22 + $0x8] sm:$0xff] (!%p1528_p2)   ;;  %v2035_v33 = vld [vmem:[%s2899_s22 + $0x10] sm:$0xff] (!%p1528_p2)  }
 0x23f   : > { %1759 = vmatprep.subr.bf16.mxu0 %v2022_v5  ;;  %v2032_v22 = vld [vmem:[#allocation11 + $0x38] sm:$0xff]   ;;  %v776_v28 = vadd.f32 %v2952_v15, %v753_v24  ;;  %v778_v30 = vadd.f32 %v2952_v15, %v755_v26  ;;  %v756_v35 = vld [vmem:[#allocation2 + $0x30] sm:$0xff]  ;;  %v759_v38 = vld [vmem:[#allocation2 + $0x48] sm:$0xff] }
 0x240   : > { %v789_v19 = vpack.c.bf16 %v774_v17, %v773_v16  ;;  %v754_v25 = vld [vmem:[#allocation2 + $0x20] sm:$0xff]  ;;  %v757_v36 = vld [vmem:[#allocation2 + $0x38] sm:$0xff]  ;;  %v779_v39 = vadd.f32 %v2952_v15, %v756_v35  ;;  %v782_v42 = vadd.f32 %v2952_v15, %v759_v38  ;;  %v760_v47 = vld [vmem:[#allocation2 + $0x50] sm:$0xff] }
 0x241   : > { %1728 = vmatpush3.bf16.msra.mxu1 %v2021_v4  ;;  %v777_v29 = vadd.f32 %v2952_v15, %v754_v25  ;;  %v790_v32 = vpack.c.bf16 %v776_v28, %v775_v27  ;;  %v758_v37 = vld [vmem:[#allocation2 + $0x40] sm:$0xff]  ;;  %v780_v40 = vadd.f32 %v2952_v15, %v757_v36  ;;  %v2036_v43 = vld [vmem:[%s2899_s22 + $0x18] sm:$0xff]   ;;  %v763_v50 = vld [vmem:[#allocation2 + $0x68] sm:$0xff]  ;;  %v783_v51 = vadd.f32 %v2952_v15, %v760_v47 }
 0x242   : > { %1760 = vmatpush3.bf16.msra.mxu0 %v2022_v5  ;;  %1729 = vmatprep.subr.bf16.mxu1 %v2023_v6  ;;  %v781_v41 = vadd.f32 %v2952_v15, %v758_v37  ;;  %v2037_v45 = vld [vmem:[%s2899_s22 + $0x20] sm:$0xff]   ;;  %v761_v48 = vld [vmem:[#allocation2 + $0x58] sm:$0xff]  ;;  %v786_v54 = vadd.f32 %v2952_v15, %v763_v50  ;;  %v2038_v55 = vld [vmem:[%s2899_s22 + $0x28] sm:$0xff]  }
 0x243   : > { %1761 = vmatprep.subr.bf16.mxu0 %v2024_v7  ;;  %1771 = vmatprep.mubr.bf16.mxu0 %v789_v19  ;;  %v791_v34 = vpack.c.bf16 %v778_v30, %v777_v29  ;;  %v792_v44 = vpack.c.bf16 %v780_v40, %v779_v39  ;;  %v762_v49 = vld [vmem:[#allocation2 + $0x60] sm:$0xff]  ;;  %v784_v52 = vadd.f32 %v2952_v15, %v761_v48  ;;  %v2039_v57 = vld [vmem:[%s2899_s22 + $0x30] sm:$0xff]   ;;  %v765_v60 = vld [vmem:[#allocation2 + $0x78] sm:$0xff] }
 0x244   : > { %v793_v46 = vpack.c.bf16 %v782_v42, %v781_v41  ;;  %v785_v53 = vadd.f32 %v2952_v15, %v762_v49  ;;  %v764_v59 = vld [vmem:[#allocation2 + $0x70] sm:$0xff]  ;;  %v788_v62 = vadd.f32 %v2952_v15, %v765_v60  ;;  %v2040_v63 = vld [vmem:[%s2899_s22 + $0x38] sm:$0xff]   ;;  %v2977_v3 = vld [vmem:[#allocation14] ss:$0 sm:$0xff] }
 0x245   : > { %1730 = vmatpush3.bf16.msra.mxu1 %v2023_v6  ;;  %v794_v56 = vpack.c.bf16 %v784_v52, %v783_v51  ;;  %v787_v61 = vadd.f32 %v2952_v15, %v764_v59 }
 0x246   : > { %1762 = vmatpush3.bf16.msra.mxu0 %v2024_v7  ;;  %1731 = vmatprep.subr.bf16.mxu1 %v2025_v8  ;;  %v795_v58 = vpack.c.bf16 %v786_v54, %v785_v53 }
 0x247   : > { %1763 = vmatprep.subr.bf16.mxu0 %v2026_v9  ;;  %v796_v0 = vpack.c.bf16 %v788_v62, %v787_v61 }
 0x249   : > { %1732 = vmatpush3.bf16.msra.mxu1 %v2025_v8 }
 0x24a   : > { %1764 = vmatpush3.bf16.msra.mxu0 %v2026_v9  ;;  %1733 = vmatprep.subr.bf16.mxu1 %v2027_v10 }
 0x24b   : > { %1765 = vmatprep.subr.bf16.mxu0 %v2028_v11 }
 0x24d   : > { %1734 = vmatpush3.bf16.msra.mxu1 %v2027_v10 }
 0x24e   : > { %1766 = vmatpush3.bf16.msra.mxu0 %v2028_v11  ;;  %1735 = vmatprep.subr.bf16.mxu1 %v2029_v18 }
 0x24f   : > { %1767 = vmatprep.subr.bf16.mxu0 %v2030_v20 }
 0x251   : > { %1736 = vmatpush3.bf16.msra.mxu1 %v2029_v18 }
 0x252   : > { %1768 = vmatpush3.bf16.msra.mxu0 %v2030_v20  ;;  %1737 = vmatprep.subr.bf16.mxu1 %v2031_v21 }
 0x253   : > { %1769 = vmatprep.subr.bf16.mxu0 %v2032_v22 }
 0x255   : > { %1738 = vmatpush3.bf16.msra.mxu1 %v2031_v21 }
 0x256   : > { %1770 = vmatpush3.bf16.msra.mxu0 %v2032_v22 }
 0x258   : > { %1740 = vmatmul.mubr.bf16.vlgmr.msra.gmra.mrb[0].mxu1 %v2034_v31 }
 0x259   : > { %1772 = vmatmul.mubr.bf16.vlgmr.msra.gmra.mrb[0].mxu0 %v790_v32  ;;  %1743 = vmatprep.mubr.bf16.mxu1 %v2035_v33 }
 0x25a   : > { %1775 = vmatprep.mubr.bf16.mxu0 %v791_v34 }
 0x260   : > { %1744 = vmatmul.mubr.bf16.gmra.mrb[4].mxu1 %v2036_v43 }
 0x261   : > { %1776 = vmatmul.mubr.bf16.gmra.mrb[4].mxu0 %v792_v44  ;;  %1747 = vmatprep.mubr.bf16.mxu1 %v2037_v45 }
 0x262   : > { %1779 = vmatprep.mubr.bf16.mxu0 %v793_v46 }
 0x268   : > { %1748 = vmatmul.mubr.bf16.gmra.mrb[8].mxu1 %v2038_v55 }
 0x269   : > { %1780 = vmatmul.mubr.bf16.gmra.mrb[8].mxu0 %v794_v56  ;;  %1751 = vmatprep.mubr.bf16.mxu1 %v2039_v57 }
 0x26a   : > { %1783 = vmatprep.mubr.bf16.mxu0 %v795_v58 }
 0x270   : > { %1752 = vmatmul.mubr.bf16.gmra.mrb[12].mxu1 %v2040_v63 }
 0x271   : > { %1784 = vmatmul.mubr.bf16.gmra.mrb[12].mxu0 %v796_v0 }
 0x32b   : > { %v1741_v1 = vpop.f32.mrb[0].mxu1 }
 0x32c   : > { %v1773_v2 = vpop.f32.mrb[0].mxu0  ;;  %v975_v4 = vpop.f32.mrb[1].mxu1 }
 0x32d   : > { %v1129_v5 = vadd.f32 %v1773_v2, %v1741_v1  ;;  %v1120_v6 = vpop.f32.mrb[1].mxu0  ;;  %v1742_v7 = vpop.f32.mrb[2].mxu1 }
 0x32e   : > { %v1121_v8 = vadd.f32 %v1120_v6, %v975_v4  ;;  %v1774_v9 = vpop.f32.mrb[2].mxu0  ;;  %v978_v10 = vpop.f32.mrb[3].mxu1 }
 0x32f   : > { %v1192_v11 = vadd.f32 %v2977_v3, %v1129_v5  ;;  %v1132_v12 = vadd.f32 %v1774_v9, %v1742_v7  ;;  %v1123_v13 = vpop.f32.mrb[3].mxu0 }
 0x330   : > { %v1190_v14 = vadd.f32 %v2977_v3, %v1121_v8  ;;  %v1124_v15 = vadd.f32 %v1123_v13, %v978_v10 }
 0x331   : > { %v1193_v16 = vadd.f32 %v2977_v3, %v1132_v12  ;;  %v1208_v18 = vmax.f32 %v1192_v11, 0.0 }
 0x332   : > { %v1191_v17 = vadd.f32 %v2977_v3, %v1124_v15  ;;  %v1206_v21 = vmax.f32 %v1190_v14, 0.0 }
 0x333   : > { %v1209_v19 = vmax.f32 %v1193_v16, 0.0  ;;  %v1745_v20 = vpop.f32.mrb[4].mxu1 }
 0x334   : > { %v1207_v22 = vmax.f32 %v1191_v17, 0.0  ;;  %v1777_v23 = vpop.f32.mrb[4].mxu0  ;;  %v991_v24 = vpop.f32.mrb[5].mxu1 }
 0x335   : > { %v1604_v25 = vpack.c.bf16 %v1209_v19, %v1208_v18  ;;  %v1145_v26 = vadd.f32 %v1777_v23, %v1745_v20  ;;  %v1136_v27 = vpop.f32.mrb[5].mxu0  ;;  %v1746_v28 = vpop.f32.mrb[6].mxu1 }
 0x336   : > { %v1599_v29 = vpack.c.bf16 %v1207_v22, %v1206_v21  ;;  %v1137_v30 = vadd.f32 %v1136_v27, %v991_v24  ;;  %v1778_v31 = vpop.f32.mrb[6].mxu0  ;;  %v994_v32 = vpop.f32.mrb[7].mxu1 }
 0x337   : > { %1636 = vst [vmem:[%s2938_s15 + $0x8] sm:$0xff] %v1604_v25   ;;  %v1196_v33 = vadd.f32 %v2977_v3, %v1145_v26  ;;  %v1148_v34 = vadd.f32 %v1778_v31, %v1746_v28  ;;  %v1139_v35 = vpop.f32.mrb[7].mxu0 }
 0x338   : > { %1600 = vst [vmem:[%s2938_s15] sm:$0xff] %v1599_v29   ;;  %v1194_v36 = vadd.f32 %v2977_v3, %v1137_v30  ;;  %v1140_v37 = vadd.f32 %v1139_v35, %v994_v32 }
 0x339   : > { %v1197_v38 = vadd.f32 %v2977_v3, %v1148_v34  ;;  %v1212_v40 = vmax.f32 %v1196_v33, 0.0 }
 0x33a   : > { %v1195_v39 = vadd.f32 %v2977_v3, %v1140_v37  ;;  %v1210_v43 = vmax.f32 %v1194_v36, 0.0 }
 0x33b   : > { %v1213_v41 = vmax.f32 %v1197_v38, 0.0  ;;  %v1749_v42 = vpop.f32.mrb[8].mxu1 }
 0x33c   : > { %v1211_v44 = vmax.f32 %v1195_v39, 0.0  ;;  %v1781_v45 = vpop.f32.mrb[8].mxu0  ;;  %v1007_v46 = vpop.f32.mrb[9].mxu1 }
 0x33d   : > { %v1614_v47 = vpack.c.bf16 %v1213_v41, %v1212_v40  ;;  %v1161_v48 = vadd.f32 %v1781_v45, %v1749_v42  ;;  %v1152_v49 = vpop.f32.mrb[9].mxu0  ;;  %v1750_v50 = vpop.f32.mrb[10].mxu1 }
 0x33e   : > { %v1609_v51 = vpack.c.bf16 %v1211_v44, %v1210_v43  ;;  %v1153_v52 = vadd.f32 %v1152_v49, %v1007_v46  ;;  %v1782_v53 = vpop.f32.mrb[10].mxu0  ;;  %v1010_v54 = vpop.f32.mrb[11].mxu1 }
 0x33f   : > { %1638 = vst [vmem:[%s2938_s15 + $0x18] sm:$0xff] %v1614_v47   ;;  %v1200_v55 = vadd.f32 %v2977_v3, %v1161_v48  ;;  %v1164_v56 = vadd.f32 %v1782_v53, %v1750_v50  ;;  %v1155_v57 = vpop.f32.mrb[11].mxu0 }
 0x340   : > { %1637 = vst [vmem:[%s2938_s15 + $0x10] sm:$0xff] %v1609_v51   ;;  %v1198_v58 = vadd.f32 %v2977_v3, %v1153_v52  ;;  %v1156_v59 = vadd.f32 %v1155_v57, %v1010_v54 }
 0x341   : > { %v1201_v60 = vadd.f32 %v2977_v3, %v1164_v56  ;;  %v1216_v62 = vmax.f32 %v1200_v55, 0.0 }
 0x342   : > { %v1199_v61 = vadd.f32 %v2977_v3, %v1156_v59  ;;  %v1214_v1 = vmax.f32 %v1198_v58, 0.0 }
 0x343   : > { %v1217_v63 = vmax.f32 %v1201_v60, 0.0  ;;  %v1753_v0 = vpop.f32.mrb[12].mxu1 }
 0x344   : > { %v1215_v2 = vmax.f32 %v1199_v61, 0.0  ;;  %v1785_v4 = vpop.f32.mrb[12].mxu0  ;;  %v1023_v5 = vpop.f32.mrb[13].mxu1 }
 0x345   : > { %v1624_v6 = vpack.c.bf16 %v1217_v63, %v1216_v62  ;;  %v1177_v7 = vadd.f32 %v1785_v4, %v1753_v0  ;;  %v1168_v8 = vpop.f32.mrb[13].mxu0  ;;  %v1754_v9 = vpop.f32.mrb[14].mxu1 }
 0x346   : > { %v1619_v10 = vpack.c.bf16 %v1215_v2, %v1214_v1  ;;  %v1169_v11 = vadd.f32 %v1168_v8, %v1023_v5  ;;  %v1786_v12 = vpop.f32.mrb[14].mxu0  ;;  %v1026_v13 = vpop.f32.mrb[15].mxu1 }
 0x347   : > { %1640 = vst [vmem:[%s2938_s15 + $0x28] sm:$0xff] %v1624_v6   ;;  %v1204_v14 = vadd.f32 %v2977_v3, %v1177_v7  ;;  %v1180_v15 = vadd.f32 %v1786_v12, %v1754_v9  ;;  %v1171_v16 = vpop.f32.mrb[15].mxu0 }
 0x348   : > { %1639 = vst [vmem:[%s2938_s15 + $0x20] sm:$0xff] %v1619_v10   ;;  %v1202_v17 = vadd.f32 %v2977_v3, %v1169_v11  ;;  %v1172_v18 = vadd.f32 %v1171_v16, %v1026_v13 }
 0x349   : > { %v1205_v19 = vadd.f32 %v2977_v3, %v1180_v15  ;;  %v1220_v21 = vmax.f32 %v1204_v14, 0.0 }
 0x34a   : > { %v1203_v20 = vadd.f32 %v2977_v3, %v1172_v18  ;;  %v1218_v23 = vmax.f32 %v1202_v17, 0.0 }
 0x34b   : > { %v1221_v22 = vmax.f32 %v1205_v19, 0.0 }
 0x34c   : > { %v1219_v24 = vmax.f32 %v1203_v20, 0.0 }
 0x34d   : > { %v1634_v25 = vpack.c.bf16 %v1221_v22, %v1220_v21 }
 0x34e   : > { %v1629_v26 = vpack.c.bf16 %v1219_v24, %v1218_v23 }
 0x34f   : > { %1642 = vst [vmem:[%s2938_s15 + $0x38] sm:$0xff] %v1634_v25  }
 0x350   : > { %1641 = vst [vmem:[%s2938_s15 + $0x30] sm:$0xff] %v1629_v26  }
 0x351 PF: > { %s3183_s2 = sld [smem:[#allocation26_spill]]  ;;  %s1316_s11 = sshll.u32 %s2938_s15, 4  ;;  %s3010_s11 = int_to_ptr.vmem [resolvable:$true] %s1316_s11 }
 0x352   : > { %s3184_s30 = sld [smem:[#allocation37_spill]]  ;;  %s3014_s16 = scalar_lea.sflag [#allocation5], %s385_s10 }
 0x353   : > { %s2243_s28 = scalar_lea.vmem %s3010_s11, 1024  ;;  %p3186_p13 = scmp.ne.s32.totalorder %s3162_s29, 0 }
 0x354   : > { %p2244_p9 = scmp.ne.s32.totalorder %s3010_s11, %s2243_s28  ;;  %s2417_s24 = smov [#allocation15]  }
 0x355   : > { %s2247_s22 = sshll.u32 %s2417_s24, 4  ;;  %s2248_s22 = int_to_ptr.vmem [resolvable:$false] %s2247_s22 }
 0x356   : > { %p2245_p5 = pnand %p2244_p9, %p3186_p13  ;;  %s2249_s23 = scalar_lea.vmem %s2248_s22, 2048 }
 0x357   : > { %s1595_s7 = sshll.u32 %s3183_s2, 10  ;;  %p2250_p12 = scmp.lt.s32.totalorder %s3010_s11, %s2248_s22 }
 0x358   : > { %s3185_s1 = smov %s3184_s30  ;;  %s3007_s3 = scalar_lea.hbm %s3184_s30, %s1595_s7 }
 0x359   : > { %p2246_p1 = pneg %p2245_p5  ;;  %p2251_p0 = scmp.lt.s32.totalorder %s2249_s23, %s2243_s28 }
 0x35b   : > { %p2252_p7 = por %p2251_p0, %p2250_p12 }
 0x35d   : > { %p2253_p4 = pnand %p2252_p7, %p2246_p1 }
 0x35f   : > { %2256 = shalt.err (!%p2253_p4)
}
 0x360   : > { %s2257_s10 = scalar_lea.hbm %s3007_s3, 1024  ;;  %s2261_s20 = scalar_lea.hbm %s3185_s1, 2048 }
 0x361   : > { %p2258_p6 = scmp.ne.s32.totalorder %s3007_s3, %s2257_s10  ;;  %p2262_p11 = scmp.lt.u32.totalorder %s3007_s3, %s3185_s1 }
 0x362   : > { %p2263_p8 = scmp.lt.u32.totalorder %s2261_s20, %s2257_s10  ;;  %p2265_p9 = scmp.lt.u32.totalorder %s2257_s10, %s3007_s3 }
 0x363   : > { %p2259_p10 = pnand %p2258_p6, %p3186_p13 }
 0x364   : > { %p2264_p2 = por %p2263_p8, %p2262_p11 }
 0x365   : > { %p2260_p3 = pneg %p2259_p10 }
 0x366   : > { %p2266_p5 = por %p2265_p9, %p2264_p2 }
 0x368   : > { %p2267_p1 = pnand %p2266_p5, %p2260_p3 }
 0x36a   : > { %2270 = shalt.err (!%p2267_p1)
}
 0x36b   : > { %s2418_s27 = smov 64   ;;  %s2419_s0 = smov 4  }
 0x36c   : > { %1841 = dma.vmem_to_hbm [thread:$0]  (%p3186_p13), %s3010_s11, 1024, %s3007_s3, %s3014_s16, %s2418_s27, %s2418_s27, %s2419_s0  }
 0x36d PF: > { %s3187_s30 = sld [smem:[#allocation22_spill]]  ;;  %p1879_p12 = scmp.ge.s32.totalorder %s2405_s14, 2 }
 0x36e   : > { %p3188_p0 = scmp.ne.s32.totalorder %s3165_s5, 0 }
 0x370   : > { %p1867_p7 = pnand %p1879_p12, %p3188_p0 }
 0x373   : > { %s1331_s28 = sand.u32 1, %s3187_s30  }
 0x374   : > { %s1332_s24 = scalar_lea.sflag [#allocation5], %s1331_s28 }
 0x375   : > { %2348 = dma.done.wait (!%p1867_p7), %s1332_s24, 1024  }
 0x376   : > { %2350 = vsyncadd (!%p1867_p7), %s1332_s24, 4294966272  ;;  %s28_s14 = sadd.s32 1, %s2405_s14   ;;  %s3190_s27 = sld [smem:[#allocation23_spill]] }
 0x377   : > { %p3043_p4 = scmp.ge.s32.totalorder %s28_s14, 6   ;;  %s3191_s28 = sld [smem:[#allocation24_spill]] }
 0x378   : > { %s3192_s29 = sld [smem:[#allocation30_spill]]  ;;  %s3193_s5 = sld [smem:[#allocation28_spill]] }
 0x379   : > { %s3194_s3 = sld [smem:[#allocation29_spill]]  ;;  %s3195_s24 = smov %s2357_s25 }
 0x37a   : > { %s3196_s25 = smov %s2361_s26  ;;  %s3197_s26 = smov %s2804_s21 }
 0x37b   : > { %s3198_s30 = smov %s2381_s8  ;;  %s3199_s8 = smov %s2385_s9 }
 0x37c   : > { %s3200_s9 = smov %s2737_s19  ;;  %s3201_s10 = smov %s2397_s12 }
 0x37d   : > { %s3202_s11 = smov %s2401_s13  ;;  %27 = sbr.rel (!%p3043_p4) target bundleno = 21 (0x15), region = 145 }
 0x37e   : > { %s3203_s12 = smov %s3193_s5 }
 0x37f   : > { %s3204_s13 = smov %s3194_s3 }
 0x384   :  { %1337 = vsyncpa [#allocation4], 1 }
 0x385   :  { %1339 = vsyncpa [#allocation4 + $0x1], 1 }
 0x386   :  { %1340 = vsyncpa [#allocation7], 1 }
 0x387   :  { %1342 = vsyncpa [#allocation7 + $0x1], 1 }
 0x388   :  { %1343 = vsyncpa [#allocation10], 1 }
 0x389   :  { %1344 = vsyncpa [#allocation13], 1 }
 0x38a   :  { %1345 = vsyncpa [#allocation5], 1 }
 0x38b   :  { %1347 = vsyncpa [#allocation5 + $0x1], 1 }

</bundles_post_ra>
